<compile_context>
chip_gen: v6e
topology: v6e:2x2x1
jax: 0.10.0
libtpu: 0.0.40
codegen_flags: <defaults>
</compile_context>

<pallas_src>
import functools

import jax
import jax.numpy as jnp
import numpy as np
from jax.experimental import pallas as pl
from jax.experimental.pallas import tpu as pltpu


def _round_up(a, b):
    return (a + b - 1) // b * b


def _ceil_div(a, b):
    return (a + b - 1) // b


# ----------------------------------------------------------------------------
# smart_padding: zero-interleaved upsampling to reach the target spatial size.
# Pure layout plumbing (scatter of zeros) -> plain JAX glue.
# ----------------------------------------------------------------------------
def smart_padding(x, target_h, target_w):
    n, c, h, w = x.shape
    dilation = 1
    stride = 1
    if h < target_h or w < target_w:
        fh = _ceil_div(target_h, h)
        fw = _ceil_div(target_w, w)
        assert fh == fw
        dilation = fh
        stride = fh
        xp = jnp.zeros((n, c, fh * h, fw * w), dtype=x.dtype)
        xp = xp.at[:, :, ::fh, ::fw].set(x)
        x = xp[:, :, :target_h, :target_w]
    return x, dilation, stride


# ----------------------------------------------------------------------------
# Fused direct-conv kernel (stride=1, dilation=1, any padding).
#   x_ref : [Cin, Hp, Wp]   whole padded image, VMEM-resident per batch item
#   w_ref : [Cout*Cin*K*K]  SMEM scalar table
#   b_ref : [Cout]          SMEM scalar table
#   o_ref : [Cout, th, OW]  one band of output rows
# im2col happens in-register: each (ci, ky, kx) tap is a shifted [th, OW]
# window sliced straight out of the VMEM image; accumulation is exact f32 on
# the VPU (the Cout=4 x Cin*K*K=27 contraction is far too degenerate for MXU).
# ----------------------------------------------------------------------------
def _direct_conv_kernel(x_ref, w_ref, b_ref, o_ref, *, cin, cout, k, th, ow):
    row0 = pl.program_id(1) * th
    accs = [jnp.zeros((th, ow), jnp.float32) for _ in range(cout)]
    for ci in range(cin):
        for ky in range(k):
            for kx in range(k):
                win = x_ref[ci, pl.ds(row0 + ky, th), pl.ds(kx, ow)]
                win = win.astype(jnp.float32)
                for co in range(cout):
                    widx = ((co * cin + ci) * k + ky) * k + kx
                    accs[co] = accs[co] + w_ref[widx] * win
    for co in range(cout):
        o_ref[co] = (accs[co] + b_ref[co]).astype(o_ref.dtype)


def _pick_row_tile(oh, n_batch):
    """Row band th that divides oh, is a multiple of 8 (or == oh), keeps bands
    <= 64 rows, and gives the (batch, row) grid >= 2 steps when possible."""
    th = oh
    while (th % 2 == 0 and (th // 2) % 8 == 0
           and (th > 64 or n_batch * (oh // th) < 2)):
        th //= 2
    return th


def conv2d_direct_pallas(x, w, b, padding):
    """stride=1 / dilation=1 Conv2d with bias.  x NCHW, w OIHW, b [Cout]."""
    n, cin, h, wdt = x.shape
    cout, _, k, _ = w.shape
    p = padding
    oh = h + 2 * p - k + 1
    ow = wdt + 2 * p - k + 1
    hp, wp = h + 2 * p, wdt + 2 * p

    xp = jnp.pad(x, ((0, 0), (0, 0), (p, p), (p, p)))
    w_flat = w.reshape(-1).astype(jnp.float32)
    b_flat = b.reshape(-1).astype(jnp.float32)

    th = _pick_row_tile(oh, n)
    kern = functools.partial(_direct_conv_kernel,
                             cin=cin, cout=cout, k=k, th=th, ow=ow)

    # resident image + double-buffered output band; only raise the scoped-VMEM
    # limit when actually needed, and stay below v7x's 64 MiB physical VMEM.
    vmem_need = 4 * (2 * cin * hp * wp + 2 * cout * th * ow) + (1 << 20)
    cparams = dict(dimension_semantics=("parallel", "parallel"))
    if vmem_need > (16 << 20):
        cparams["vmem_limit_bytes"] = int(min(vmem_need, 56 << 20))

    return pl.pallas_call(
        kern,
        out_shape=jax.ShapeDtypeStruct((n, cout, oh, ow), x.dtype),
        grid_spec=pltpu.PrefetchScalarGridSpec(
            num_scalar_prefetch=0,
            grid=(n, oh // th),
            in_specs=[
                # whole padded image; index_map ignores the row axis so the
                # block stays VMEM-resident across all row tiles of one image
                pl.BlockSpec((None, cin, hp, wp), lambda bi, ri: (bi, 0, 0, 0)),
                pl.BlockSpec(memory_space=pltpu.MemorySpace.SMEM),
                pl.BlockSpec(memory_space=pltpu.MemorySpace.SMEM),
            ],
            out_specs=pl.BlockSpec((None, cout, th, ow),
                                   lambda bi, ri: (bi, 0, ri, 0)),
        ),
        compiler_params=pltpu.CompilerParams(**cparams),
    )(xp, w_flat, b_flat)


# ----------------------------------------------------------------------------
# Fallback path (general stride/dilation/padding): lane-dense im2col GEMM.
# Only reached when the smart-padding algebra cannot collapse the conv
# (even kernel size, or padding that is not a multiple of the upsample factor).
# ----------------------------------------------------------------------------
def _conv_mm_kernel(w_ref, p_ref, o_ref):
    o_ref[...] = jnp.dot(w_ref[...], p_ref[...],
                         preferred_element_type=jnp.float32).astype(o_ref.dtype)


def conv2d_im2col_pallas(x, w, b, stride, dilation, padding, *, tm_max=16384):
    """General dilated/strided Conv2d with bias.  x NCHW, w OIHW, b [Cout]."""
    n, cin, h, wdt = x.shape
    cout, _, k, _ = w.shape
    s, d, p = stride, dilation, padding

    oh = (h + 2 * p - d * (k - 1) - 1) // s + 1
    ow = (wdt + 2 * p - d * (k - 1) - 1) // s + 1
    m = n * oh * ow

    xp = jnp.pad(x, ((0, 0), (0, 0), (p, p), (p, p)))

    # im2col, transposed: rows (ci, ky, kx) match w.reshape(Cout, Cin*K*K);
    # columns (n, oy, ox) keep M on the lane axis.
    taps = []
    for ky in range(k):
        for kx in range(k):
            win = xp[:, :,
                     ky * d: ky * d + s * (oh - 1) + 1: s,
                     kx * d: kx * d + s * (ow - 1) + 1: s]        # [N,Cin,OH,OW]
            taps.append(jnp.transpose(win, (1, 0, 2, 3)).reshape(cin, m))
    patches_t = jnp.transpose(jnp.stack(taps, axis=0),
                              (1, 0, 2)).reshape(cin * k * k, m)  # [Cin*K*K, M]
    # fold the bias into the contraction via a constant ones-row
    patches_t = jnp.concatenate(
        [patches_t, jnp.ones((1, m), patches_t.dtype)], axis=0)
    kdim = cin * k * k + 1
    kdim_pad = _round_up(kdim, 8)       # sublane-aligned contraction dim
    cout_pad = _round_up(cout, 8)       # unmasked sublane stores
    patches_t = jnp.pad(patches_t, ((0, kdim_pad - kdim), (0, 0)))

    w_aug = jnp.concatenate(
        [w.reshape(cout, cin * k * k), b.reshape(cout, 1)], axis=1)
    w_aug = jnp.pad(w_aug, ((0, cout_pad - cout), (0, kdim_pad - kdim)))

    # balanced lane tiling of M (avoids the near-2x padding blow-up when m is
    # just above tm_max)
    n_tiles = max(1, _ceil_div(m, tm_max))
    tm = _round_up(_ceil_div(m, n_tiles), 128)
    m_pad = _round_up(m, tm)
    if m_pad != m:
        patches_t = jnp.pad(patches_t, ((0, 0), (0, m_pad - m)))

    out_t = pl.pallas_call(
        _conv_mm_kernel,
        out_shape=jax.ShapeDtypeStruct((cout_pad, m_pad), x.dtype),
        grid_spec=pltpu.PrefetchScalarGridSpec(
            num_scalar_prefetch=0,
            grid=(m_pad // tm,),
            in_specs=[
                pl.BlockSpec((cout_pad, kdim_pad), lambda i: (0, 0)),  # resident
                pl.BlockSpec((kdim_pad, tm), lambda i: (0, i)),
            ],
            out_specs=pl.BlockSpec((cout_pad, tm), lambda i: (0, i)),
        ),
        compiler_params=pltpu.CompilerParams(
            dimension_semantics=("parallel",)),
    )(w_aug, patches_t)

    return out_t[:cout, :m].reshape(cout, n, oh, ow).transpose(1, 0, 2, 3)


# ----------------------------------------------------------------------------
# SmartConv.forward
# ----------------------------------------------------------------------------
def smart_conv_forward(x, weight, bias, target_h, target_w, kernel_size,
                       padding=0):
    n, _, h, w = x.shape
    k = kernel_size

    # factor smart_padding would use, computed without materializing the upsample
    if h < target_h or w < target_w:
        fh = _ceil_div(target_h, h)
        fw = _ceil_div(target_w, w)
        assert fh == fw
        f = fh
    else:
        f = 1
    adjusted_padding = (k - 1) * f // 2 + padding

    # TODO(synk): the PyTorch module re-creates nn.Conv2d (fresh random weights)
    # inside every forward(); weights/bias are treated as fixed parameters here.
    if f == 1:
        y = conv2d_direct_pallas(x, weight, bias, adjusted_padding)
    elif adjusted_padding % f == 0:
        # smart-padding algebra: with stride == dilation == f and padding a
        # multiple of f, the conv on the zero-interleaved input only samples
        # original-lattice points -> identical result from a plain stride-1
        # conv on the (cropped) original input, with f^2 less work.
        h_eff = _ceil_div(target_h, f)
        w_eff = _ceil_div(target_w, f)
        xc = x[:, :, :h_eff, :w_eff]
        y = conv2d_direct_pallas(xc, weight, bias, adjusted_padding // f)
    else:
        # rare general case: materialize the zero-interleave and run the
        # dilated/strided conv as a lane-dense im2col GEMM.
        x1, d, s = smart_padding(x, target_h, target_w)
        y = conv2d_im2col_pallas(x1, weight, bias, s, d, adjusted_padding)

    y, _, _ = smart_padding(y, target_h, target_w)
    return y


if __name__ == "__main__":
    in_channels = 3
    out_channels = 4
    kernel_size = 3
    target_height = 16
    target_width = 16

    key = jax.random.PRNGKey(0)
    kx, kw, kb = jax.random.split(key, 3)

    # input smaller than target -> exercises the smart (zero-interleave) path
    x = jax.random.normal(kx, (2, in_channels, 8, 8), dtype=jnp.float32)

    # deterministic params, matching nn.Conv2d's default U(-1/sqrt(fan_in), ...)
    fan_in = in_channels * kernel_size * kernel_size
    bound = 1.0 / (fan_in ** 0.5)
    weight = jax.random.uniform(
        kw, (out_channels, in_channels, kernel_size, kernel_size),
        dtype=jnp.float32, minval=-bound, maxval=bound)
    bias = jax.random.uniform(
        kb, (out_channels,), dtype=jnp.float32, minval=-bound, maxval=bound)

    out = smart_conv_forward(x, weight, bias, target_height, target_width,
                             kernel_size)
    out = jax.block_until_ready(out)
    assert out.shape == (2, out_channels, target_height, target_width)

    # pure-JAX reference of the literal original path (zero-interleave + dilated conv)
    def reference(xin, padding, precision):
        x1, d, s = smart_padding(xin, target_height, target_width)
        p = (kernel_size - 1) * d // 2 + padding
        r = jax.lax.conv_general_dilated(
            x1, weight, window_strides=(s, s), padding=[(p, p), (p, p)],
            rhs_dilation=(d, d), dimension_numbers=("NCHW", "OIHW", "NCHW"),
            precision=precision)
        r = r + bias.reshape(1, -1, 1, 1)
        r, _, _ = smart_padding(r, target_height, target_width)
        return r

    # main (fused direct) path: exact-f32 VPU accumulation vs highest-precision ref
    ref = reference(x, 0, jax.lax.Precision.HIGHEST)
    np.testing.assert_allclose(np.asarray(out), np.asarray(ref),
                               rtol=1e-4, atol=1e-4)

    # general fallback path (padding=1 -> adjusted padding 3 is not a multiple of
    # the upsample factor 2); both sides use default MXU precision.
    out_fb = smart_conv_forward(x, weight, bias, target_height, target_width,
                                kernel_size, padding=1)
    out_fb = jax.block_until_ready(out_fb)
    ref_fb = reference(x, 1, None)
    np.testing.assert_allclose(np.asarray(out_fb), np.asarray(ref_fb),
                               rtol=1e-3, atol=1e-3)

    print("KERNEL_OK")
</pallas_src>

<mosaic_0001>
module attributes {stable_mosaic.version = 11 : i64} {
  func.func @_direct_conv_kernel(%arg0: i32, %arg1: i32, %arg2: memref<1x3x10x10xf32, #tpu.memory_space<vmem>>, %arg3: memref<108xf32, #tpu.memory_space<smem>>, %arg4: memref<4xf32, #tpu.memory_space<smem>>, %arg5: memref<1x4x8x8xf32, #tpu.memory_space<vmem>>) attributes {dimension_semantics = [#tpu.dimension_semantics<parallel>, #tpu.dimension_semantics<parallel>], iteration_bounds = array<i64: 2, 1>, scalar_prefetch = 0 : i64, scratch_operands = 0 : i64, tpu.core_type = #tpu.core_type<tc>, window_params = [{transform_indices = @transform_0, window_bounds = array<i64: 1, 3, 10, 10>}, {transform_indices = @transform_1, window_bounds = array<i64: 108>}, {transform_indices = @transform_2, window_bounds = array<i64: 4>}, {transform_indices = @transform_3, window_bounds = array<i64: 1, 4, 8, 8>}]} {
    %c8_i32 = arith.constant 8 : i32
    %0 = arith.muli %arg1, %c8_i32 : i32
    %cst = arith.constant 0.000000e+00 : f32
    %1 = vector.broadcast %cst : f32 to vector<8x8xf32>
    %cst_0 = arith.constant 0.000000e+00 : f32
    %2 = vector.broadcast %cst_0 : f32 to vector<8x8xf32>
    %cst_1 = arith.constant 0.000000e+00 : f32
    %3 = vector.broadcast %cst_1 : f32 to vector<8x8xf32>
    %cst_2 = arith.constant 0.000000e+00 : f32
    %4 = vector.broadcast %cst_2 : f32 to vector<8x8xf32>
    %c0_i32 = arith.constant 0 : i32
    %5 = arith.addi %0, %c0_i32 : i32
    %c0 = arith.constant 0 : index
    %c0_3 = arith.constant 0 : index
    %6 = arith.index_cast %5 : i32 to index
    %c0_4 = arith.constant 0 : index
    %7 = vector.load %arg2[%c0, %c0_3, %6, %c0_4] : memref<1x3x10x10xf32, #tpu.memory_space<vmem>>, vector<1x1x8x8xf32>
    %8 = vector.shape_cast %7 : vector<1x1x8x8xf32> to vector<8x8xf32>
    %c0_5 = arith.constant 0 : index
    %9 = memref.load %arg3[%c0_5] : memref<108xf32, #tpu.memory_space<smem>>
    %10 = vector.broadcast %9 : f32 to vector<8x8xf32>
    %11 = arith.mulf %10, %8 : vector<8x8xf32>
    %12 = arith.addf %1, %11 : vector<8x8xf32>
    %c27 = arith.constant 27 : index
    %13 = memref.load %arg3[%c27] : memref<108xf32, #tpu.memory_space<smem>>
    %14 = vector.broadcast %13 : f32 to vector<8x8xf32>
    %15 = arith.mulf %14, %8 : vector<8x8xf32>
    %16 = arith.addf %2, %15 : vector<8x8xf32>
    %c54 = arith.constant 54 : index
    %17 = memref.load %arg3[%c54] : memref<108xf32, #tpu.memory_space<smem>>
    %18 = vector.broadcast %17 : f32 to vector<8x8xf32>
    %19 = arith.mulf %18, %8 : vector<8x8xf32>
    %20 = arith.addf %3, %19 : vector<8x8xf32>
    %c81 = arith.constant 81 : index
    %21 = memref.load %arg3[%c81] : memref<108xf32, #tpu.memory_space<smem>>
    %22 = vector.broadcast %21 : f32 to vector<8x8xf32>
    %23 = arith.mulf %22, %8 : vector<8x8xf32>
    %24 = arith.addf %4, %23 : vector<8x8xf32>
    %c0_i32_6 = arith.constant 0 : i32
    %25 = arith.addi %0, %c0_i32_6 : i32
    %c0_7 = arith.constant 0 : index
    %c0_8 = arith.constant 0 : index
    %26 = arith.index_cast %25 : i32 to index
    %c1 = arith.constant 1 : index
    %27 = vector.load %arg2[%c0_7, %c0_8, %26, %c1] : memref<1x3x10x10xf32, #tpu.memory_space<vmem>>, vector<1x1x8x8xf32>
    %28 = vector.shape_cast %27 : vector<1x1x8x8xf32> to vector<8x8xf32>
    %c1_9 = arith.constant 1 : index
    %29 = memref.load %arg3[%c1_9] : memref<108xf32, #tpu.memory_space<smem>>
    %30 = vector.broadcast %29 : f32 to vector<8x8xf32>
    %31 = arith.mulf %30, %28 : vector<8x8xf32>
    %32 = arith.addf %12, %31 : vector<8x8xf32>
    %c28 = arith.constant 28 : index
    %33 = memref.load %arg3[%c28] : memref<108xf32, #tpu.memory_space<smem>>
    %34 = vector.broadcast %33 : f32 to vector<8x8xf32>
    %35 = arith.mulf %34, %28 : vector<8x8xf32>
    %36 = arith.addf %16, %35 : vector<8x8xf32>
    %c55 = arith.constant 55 : index
    %37 = memref.load %arg3[%c55] : memref<108xf32, #tpu.memory_space<smem>>
    %38 = vector.broadcast %37 : f32 to vector<8x8xf32>
    %39 = arith.mulf %38, %28 : vector<8x8xf32>
    %40 = arith.addf %20, %39 : vector<8x8xf32>
    %c82 = arith.constant 82 : index
    %41 = memref.load %arg3[%c82] : memref<108xf32, #tpu.memory_space<smem>>
    %42 = vector.broadcast %41 : f32 to vector<8x8xf32>
    %43 = arith.mulf %42, %28 : vector<8x8xf32>
    %44 = arith.addf %24, %43 : vector<8x8xf32>
    %c0_i32_10 = arith.constant 0 : i32
    %45 = arith.addi %0, %c0_i32_10 : i32
    %c0_11 = arith.constant 0 : index
    %c0_12 = arith.constant 0 : index
    %46 = arith.index_cast %45 : i32 to index
    %c2 = arith.constant 2 : index
    %47 = vector.load %arg2[%c0_11, %c0_12, %46, %c2] : memref<1x3x10x10xf32, #tpu.memory_space<vmem>>, vector<1x1x8x8xf32>
    %48 = vector.shape_cast %47 : vector<1x1x8x8xf32> to vector<8x8xf32>
    %c2_13 = arith.constant 2 : index
    %49 = memref.load %arg3[%c2_13] : memref<108xf32, #tpu.memory_space<smem>>
    %50 = vector.broadcast %49 : f32 to vector<8x8xf32>
    %51 = arith.mulf %50, %48 : vector<8x8xf32>
    %52 = arith.addf %32, %51 : vector<8x8xf32>
    %c29 = arith.constant 29 : index
    %53 = memref.load %arg3[%c29] : memref<108xf32, #tpu.memory_space<smem>>
    %54 = vector.broadcast %53 : f32 to vector<8x8xf32>
    %55 = arith.mulf %54, %48 : vector<8x8xf32>
    %56 = arith.addf %36, %55 : vector<8x8xf32>
    %c56 = arith.constant 56 : index
    %57 = memref.load %arg3[%c56] : memref<108xf32, #tpu.memory_space<smem>>
    %58 = vector.broadcast %57 : f32 to vector<8x8xf32>
    %59 = arith.mulf %58, %48 : vector<8x8xf32>
    %60 = arith.addf %40, %59 : vector<8x8xf32>
    %c83 = arith.constant 83 : index
    %61 = memref.load %arg3[%c83] : memref<108xf32, #tpu.memory_space<smem>>
    %62 = vector.broadcast %61 : f32 to vector<8x8xf32>
    %63 = arith.mulf %62, %48 : vector<8x8xf32>
    %64 = arith.addf %44, %63 : vector<8x8xf32>
    %c1_i32 = arith.constant 1 : i32
    %65 = arith.addi %0, %c1_i32 : i32
    %c0_14 = arith.constant 0 : index
    %c0_15 = arith.constant 0 : index
    %66 = arith.index_cast %65 : i32 to index
    %c0_16 = arith.constant 0 : index
    %67 = vector.load %arg2[%c0_14, %c0_15, %66, %c0_16] : memref<1x3x10x10xf32, #tpu.memory_space<vmem>>, vector<1x1x8x8xf32>
    %68 = vector.shape_cast %67 : vector<1x1x8x8xf32> to vector<8x8xf32>
    %c3 = arith.constant 3 : index
    %69 = memref.load %arg3[%c3] : memref<108xf32, #tpu.memory_space<smem>>
    %70 = vector.broadcast %69 : f32 to vector<8x8xf32>
    %71 = arith.mulf %70, %68 : vector<8x8xf32>
    %72 = arith.addf %52, %71 : vector<8x8xf32>
    %c30 = arith.constant 30 : index
    %73 = memref.load %arg3[%c30] : memref<108xf32, #tpu.memory_space<smem>>
    %74 = vector.broadcast %73 : f32 to vector<8x8xf32>
    %75 = arith.mulf %74, %68 : vector<8x8xf32>
    %76 = arith.addf %56, %75 : vector<8x8xf32>
    %c57 = arith.constant 57 : index
    %77 = memref.load %arg3[%c57] : memref<108xf32, #tpu.memory_space<smem>>
    %78 = vector.broadcast %77 : f32 to vector<8x8xf32>
    %79 = arith.mulf %78, %68 : vector<8x8xf32>
    %80 = arith.addf %60, %79 : vector<8x8xf32>
    %c84 = arith.constant 84 : index
    %81 = memref.load %arg3[%c84] : memref<108xf32, #tpu.memory_space<smem>>
    %82 = vector.broadcast %81 : f32 to vector<8x8xf32>
    %83 = arith.mulf %82, %68 : vector<8x8xf32>
    %84 = arith.addf %64, %83 : vector<8x8xf32>
    %c1_i32_17 = arith.constant 1 : i32
    %85 = arith.addi %0, %c1_i32_17 : i32
    %c0_18 = arith.constant 0 : index
    %c0_19 = arith.constant 0 : index
    %86 = arith.index_cast %85 : i32 to index
    %c1_20 = arith.constant 1 : index
    %87 = vector.load %arg2[%c0_18, %c0_19, %86, %c1_20] : memref<1x3x10x10xf32, #tpu.memory_space<vmem>>, vector<1x1x8x8xf32>
    %88 = vector.shape_cast %87 : vector<1x1x8x8xf32> to vector<8x8xf32>
    %c4 = arith.constant 4 : index
    %89 = memref.load %arg3[%c4] : memref<108xf32, #tpu.memory_space<smem>>
    %90 = vector.broadcast %89 : f32 to vector<8x8xf32>
    %91 = arith.mulf %90, %88 : vector<8x8xf32>
    %92 = arith.addf %72, %91 : vector<8x8xf32>
    %c31 = arith.constant 31 : index
    %93 = memref.load %arg3[%c31] : memref<108xf32, #tpu.memory_space<smem>>
    %94 = vector.broadcast %93 : f32 to vector<8x8xf32>
    %95 = arith.mulf %94, %88 : vector<8x8xf32>
    %96 = arith.addf %76, %95 : vector<8x8xf32>
    %c58 = arith.constant 58 : index
    %97 = memref.load %arg3[%c58] : memref<108xf32, #tpu.memory_space<smem>>
    %98 = vector.broadcast %97 : f32 to vector<8x8xf32>
    %99 = arith.mulf %98, %88 : vector<8x8xf32>
    %100 = arith.addf %80, %99 : vector<8x8xf32>
    %c85 = arith.constant 85 : index
    %101 = memref.load %arg3[%c85] : memref<108xf32, #tpu.memory_space<smem>>
    %102 = vector.broadcast %101 : f32 to vector<8x8xf32>
    %103 = arith.mulf %102, %88 : vector<8x8xf32>
    %104 = arith.addf %84, %103 : vector<8x8xf32>
    %c1_i32_21 = arith.constant 1 : i32
    %105 = arith.addi %0, %c1_i32_21 : i32
    %c0_22 = arith.constant 0 : index
    %c0_23 = arith.constant 0 : index
    %106 = arith.index_cast %105 : i32 to index
    %c2_24 = arith.constant 2 : index
    %107 = vector.load %arg2[%c0_22, %c0_23, %106, %c2_24] : memref<1x3x10x10xf32, #tpu.memory_space<vmem>>, vector<1x1x8x8xf32>
    %108 = vector.shape_cast %107 : vector<1x1x8x8xf32> to vector<8x8xf32>
    %c5 = arith.constant 5 : index
    %109 = memref.load %arg3[%c5] : memref<108xf32, #tpu.memory_space<smem>>
    %110 = vector.broadcast %109 : f32 to vector<8x8xf32>
    %111 = arith.mulf %110, %108 : vector<8x8xf32>
    %112 = arith.addf %92, %111 : vector<8x8xf32>
    %c32 = arith.constant 32 : index
    %113 = memref.load %arg3[%c32] : memref<108xf32, #tpu.memory_space<smem>>
    %114 = vector.broadcast %113 : f32 to vector<8x8xf32>
    %115 = arith.mulf %114, %108 : vector<8x8xf32>
    %116 = arith.addf %96, %115 : vector<8x8xf32>
    %c59 = arith.constant 59 : index
    %117 = memref.load %arg3[%c59] : memref<108xf32, #tpu.memory_space<smem>>
    %118 = vector.broadcast %117 : f32 to vector<8x8xf32>
    %119 = arith.mulf %118, %108 : vector<8x8xf32>
    %120 = arith.addf %100, %119 : vector<8x8xf32>
    %c86 = arith.constant 86 : index
    %121 = memref.load %arg3[%c86] : memref<108xf32, #tpu.memory_space<smem>>
    %122 = vector.broadcast %121 : f32 to vector<8x8xf32>
    %123 = arith.mulf %122, %108 : vector<8x8xf32>
    %124 = arith.addf %104, %123 : vector<8x8xf32>
    %c2_i32 = arith.constant 2 : i32
    %125 = arith.addi %0, %c2_i32 : i32
    %c0_25 = arith.constant 0 : index
    %c0_26 = arith.constant 0 : index
    %126 = arith.index_cast %125 : i32 to index
    %c0_27 = arith.constant 0 : index
    %127 = vector.load %arg2[%c0_25, %c0_26, %126, %c0_27] : memref<1x3x10x10xf32, #tpu.memory_space<vmem>>, vector<1x1x8x8xf32>
    %128 = vector.shape_cast %127 : vector<1x1x8x8xf32> to vector<8x8xf32>
    %c6 = arith.constant 6 : index
    %129 = memref.load %arg3[%c6] : memref<108xf32, #tpu.memory_space<smem>>
    %130 = vector.broadcast %129 : f32 to vector<8x8xf32>
    %131 = arith.mulf %130, %128 : vector<8x8xf32>
    %132 = arith.addf %112, %131 : vector<8x8xf32>
    %c33 = arith.constant 33 : index
    %133 = memref.load %arg3[%c33] : memref<108xf32, #tpu.memory_space<smem>>
    %134 = vector.broadcast %133 : f32 to vector<8x8xf32>
    %135 = arith.mulf %134, %128 : vector<8x8xf32>
    %136 = arith.addf %116, %135 : vector<8x8xf32>
    %c60 = arith.constant 60 : index
    %137 = memref.load %arg3[%c60] : memref<108xf32, #tpu.memory_space<smem>>
    %138 = vector.broadcast %137 : f32 to vector<8x8xf32>
    %139 = arith.mulf %138, %128 : vector<8x8xf32>
    %140 = arith.addf %120, %139 : vector<8x8xf32>
    %c87 = arith.constant 87 : index
    %141 = memref.load %arg3[%c87] : memref<108xf32, #tpu.memory_space<smem>>
    %142 = vector.broadcast %141 : f32 to vector<8x8xf32>
    %143 = arith.mulf %142, %128 : vector<8x8xf32>
    %144 = arith.addf %124, %143 : vector<8x8xf32>
    %c2_i32_28 = arith.constant 2 : i32
    %145 = arith.addi %0, %c2_i32_28 : i32
    %c0_29 = arith.constant 0 : index
    %c0_30 = arith.constant 0 : index
    %146 = arith.index_cast %145 : i32 to index
    %c1_31 = arith.constant 1 : index
    %147 = vector.load %arg2[%c0_29, %c0_30, %146, %c1_31] : memref<1x3x10x10xf32, #tpu.memory_space<vmem>>, vector<1x1x8x8xf32>
    %148 = vector.shape_cast %147 : vector<1x1x8x8xf32> to vector<8x8xf32>
    %c7 = arith.constant 7 : index
    %149 = memref.load %arg3[%c7] : memref<108xf32, #tpu.memory_space<smem>>
    %150 = vector.broadcast %149 : f32 to vector<8x8xf32>
    %151 = arith.mulf %150, %148 : vector<8x8xf32>
    %152 = arith.addf %132, %151 : vector<8x8xf32>
    %c34 = arith.constant 34 : index
    %153 = memref.load %arg3[%c34] : memref<108xf32, #tpu.memory_space<smem>>
    %154 = vector.broadcast %153 : f32 to vector<8x8xf32>
    %155 = arith.mulf %154, %148 : vector<8x8xf32>
    %156 = arith.addf %136, %155 : vector<8x8xf32>
    %c61 = arith.constant 61 : index
    %157 = memref.load %arg3[%c61] : memref<108xf32, #tpu.memory_space<smem>>
    %158 = vector.broadcast %157 : f32 to vector<8x8xf32>
    %159 = arith.mulf %158, %148 : vector<8x8xf32>
    %160 = arith.addf %140, %159 : vector<8x8xf32>
    %c88 = arith.constant 88 : index
    %161 = memref.load %arg3[%c88] : memref<108xf32, #tpu.memory_space<smem>>
    %162 = vector.broadcast %161 : f32 to vector<8x8xf32>
    %163 = arith.mulf %162, %148 : vector<8x8xf32>
    %164 = arith.addf %144, %163 : vector<8x8xf32>
    %c2_i32_32 = arith.constant 2 : i32
    %165 = arith.addi %0, %c2_i32_32 : i32
    %c0_33 = arith.constant 0 : index
    %c0_34 = arith.constant 0 : index
    %166 = arith.index_cast %165 : i32 to index
    %c2_35 = arith.constant 2 : index
    %167 = vector.load %arg2[%c0_33, %c0_34, %166, %c2_35] : memref<1x3x10x10xf32, #tpu.memory_space<vmem>>, vector<1x1x8x8xf32>
    %168 = vector.shape_cast %167 : vector<1x1x8x8xf32> to vector<8x8xf32>
    %c8 = arith.constant 8 : index
    %169 = memref.load %arg3[%c8] : memref<108xf32, #tpu.memory_space<smem>>
    %170 = vector.broadcast %169 : f32 to vector<8x8xf32>
    %171 = arith.mulf %170, %168 : vector<8x8xf32>
    %172 = arith.addf %152, %171 : vector<8x8xf32>
    %c35 = arith.constant 35 : index
    %173 = memref.load %arg3[%c35] : memref<108xf32, #tpu.memory_space<smem>>
    %174 = vector.broadcast %173 : f32 to vector<8x8xf32>
    %175 = arith.mulf %174, %168 : vector<8x8xf32>
    %176 = arith.addf %156, %175 : vector<8x8xf32>
    %c62 = arith.constant 62 : index
    %177 = memref.load %arg3[%c62] : memref<108xf32, #tpu.memory_space<smem>>
    %178 = vector.broadcast %177 : f32 to vector<8x8xf32>
    %179 = arith.mulf %178, %168 : vector<8x8xf32>
    %180 = arith.addf %160, %179 : vector<8x8xf32>
    %c89 = arith.constant 89 : index
    %181 = memref.load %arg3[%c89] : memref<108xf32, #tpu.memory_space<smem>>
    %182 = vector.broadcast %181 : f32 to vector<8x8xf32>
    %183 = arith.mulf %182, %168 : vector<8x8xf32>
    %184 = arith.addf %164, %183 : vector<8x8xf32>
    %c0_i32_36 = arith.constant 0 : i32
    %185 = arith.addi %0, %c0_i32_36 : i32
    %c0_37 = arith.constant 0 : index
    %c1_38 = arith.constant 1 : index
    %186 = arith.index_cast %185 : i32 to index
    %c0_39 = arith.constant 0 : index
    %187 = vector.load %arg2[%c0_37, %c1_38, %186, %c0_39] : memref<1x3x10x10xf32, #tpu.memory_space<vmem>>, vector<1x1x8x8xf32>
    %188 = vector.shape_cast %187 : vector<1x1x8x8xf32> to vector<8x8xf32>
    %c9 = arith.constant 9 : index
    %189 = memref.load %arg3[%c9] : memref<108xf32, #tpu.memory_space<smem>>
    %190 = vector.broadcast %189 : f32 to vector<8x8xf32>
    %191 = arith.mulf %190, %188 : vector<8x8xf32>
    %192 = arith.addf %172, %191 : vector<8x8xf32>
    %c36 = arith.constant 36 : index
    %193 = memref.load %arg3[%c36] : memref<108xf32, #tpu.memory_space<smem>>
    %194 = vector.broadcast %193 : f32 to vector<8x8xf32>
    %195 = arith.mulf %194, %188 : vector<8x8xf32>
    %196 = arith.addf %176, %195 : vector<8x8xf32>
    %c63 = arith.constant 63 : index
    %197 = memref.load %arg3[%c63] : memref<108xf32, #tpu.memory_space<smem>>
    %198 = vector.broadcast %197 : f32 to vector<8x8xf32>
    %199 = arith.mulf %198, %188 : vector<8x8xf32>
    %200 = arith.addf %180, %199 : vector<8x8xf32>
    %c90 = arith.constant 90 : index
    %201 = memref.load %arg3[%c90] : memref<108xf32, #tpu.memory_space<smem>>
    %202 = vector.broadcast %201 : f32 to vector<8x8xf32>
    %203 = arith.mulf %202, %188 : vector<8x8xf32>
    %204 = arith.addf %184, %203 : vector<8x8xf32>
    %c0_i32_40 = arith.constant 0 : i32
    %205 = arith.addi %0, %c0_i32_40 : i32
    %c0_41 = arith.constant 0 : index
    %c1_42 = arith.constant 1 : index
    %206 = arith.index_cast %205 : i32 to index
    %c1_43 = arith.constant 1 : index
    %207 = vector.load %arg2[%c0_41, %c1_42, %206, %c1_43] : memref<1x3x10x10xf32, #tpu.memory_space<vmem>>, vector<1x1x8x8xf32>
    %208 = vector.shape_cast %207 : vector<1x1x8x8xf32> to vector<8x8xf32>
    %c10 = arith.constant 10 : index
    %209 = memref.load %arg3[%c10] : memref<108xf32, #tpu.memory_space<smem>>
    %210 = vector.broadcast %209 : f32 to vector<8x8xf32>
    %211 = arith.mulf %210, %208 : vector<8x8xf32>
    %212 = arith.addf %192, %211 : vector<8x8xf32>
    %c37 = arith.constant 37 : index
    %213 = memref.load %arg3[%c37] : memref<108xf32, #tpu.memory_space<smem>>
    %214 = vector.broadcast %213 : f32 to vector<8x8xf32>
    %215 = arith.mulf %214, %208 : vector<8x8xf32>
    %216 = arith.addf %196, %215 : vector<8x8xf32>
    %c64 = arith.constant 64 : index
    %217 = memref.load %arg3[%c64] : memref<108xf32, #tpu.memory_space<smem>>
    %218 = vector.broadcast %217 : f32 to vector<8x8xf32>
    %219 = arith.mulf %218, %208 : vector<8x8xf32>
    %220 = arith.addf %200, %219 : vector<8x8xf32>
    %c91 = arith.constant 91 : index
    %221 = memref.load %arg3[%c91] : memref<108xf32, #tpu.memory_space<smem>>
    %222 = vector.broadcast %221 : f32 to vector<8x8xf32>
    %223 = arith.mulf %222, %208 : vector<8x8xf32>
    %224 = arith.addf %204, %223 : vector<8x8xf32>
    %c0_i32_44 = arith.constant 0 : i32
    %225 = arith.addi %0, %c0_i32_44 : i32
    %c0_45 = arith.constant 0 : index
    %c1_46 = arith.constant 1 : index
    %226 = arith.index_cast %225 : i32 to index
    %c2_47 = arith.constant 2 : index
    %227 = vector.load %arg2[%c0_45, %c1_46, %226, %c2_47] : memref<1x3x10x10xf32, #tpu.memory_space<vmem>>, vector<1x1x8x8xf32>
    %228 = vector.shape_cast %227 : vector<1x1x8x8xf32> to vector<8x8xf32>
    %c11 = arith.constant 11 : index
    %229 = memref.load %arg3[%c11] : memref<108xf32, #tpu.memory_space<smem>>
    %230 = vector.broadcast %229 : f32 to vector<8x8xf32>
    %231 = arith.mulf %230, %228 : vector<8x8xf32>
    %232 = arith.addf %212, %231 : vector<8x8xf32>
    %c38 = arith.constant 38 : index
    %233 = memref.load %arg3[%c38] : memref<108xf32, #tpu.memory_space<smem>>
    %234 = vector.broadcast %233 : f32 to vector<8x8xf32>
    %235 = arith.mulf %234, %228 : vector<8x8xf32>
    %236 = arith.addf %216, %235 : vector<8x8xf32>
    %c65 = arith.constant 65 : index
    %237 = memref.load %arg3[%c65] : memref<108xf32, #tpu.memory_space<smem>>
    %238 = vector.broadcast %237 : f32 to vector<8x8xf32>
    %239 = arith.mulf %238, %228 : vector<8x8xf32>
    %240 = arith.addf %220, %239 : vector<8x8xf32>
    %c92 = arith.constant 92 : index
    %241 = memref.load %arg3[%c92] : memref<108xf32, #tpu.memory_space<smem>>
    %242 = vector.broadcast %241 : f32 to vector<8x8xf32>
    %243 = arith.mulf %242, %228 : vector<8x8xf32>
    %244 = arith.addf %224, %243 : vector<8x8xf32>
    %c1_i32_48 = arith.constant 1 : i32
    %245 = arith.addi %0, %c1_i32_48 : i32
    %c0_49 = arith.constant 0 : index
    %c1_50 = arith.constant 1 : index
    %246 = arith.index_cast %245 : i32 to index
    %c0_51 = arith.constant 0 : index
    %247 = vector.load %arg2[%c0_49, %c1_50, %246, %c0_51] : memref<1x3x10x10xf32, #tpu.memory_space<vmem>>, vector<1x1x8x8xf32>
    %248 = vector.shape_cast %247 : vector<1x1x8x8xf32> to vector<8x8xf32>
    %c12 = arith.constant 12 : index
    %249 = memref.load %arg3[%c12] : memref<108xf32, #tpu.memory_space<smem>>
    %250 = vector.broadcast %249 : f32 to vector<8x8xf32>
    %251 = arith.mulf %250, %248 : vector<8x8xf32>
    %252 = arith.addf %232, %251 : vector<8x8xf32>
    %c39 = arith.constant 39 : index
    %253 = memref.load %arg3[%c39] : memref<108xf32, #tpu.memory_space<smem>>
    %254 = vector.broadcast %253 : f32 to vector<8x8xf32>
    %255 = arith.mulf %254, %248 : vector<8x8xf32>
    %256 = arith.addf %236, %255 : vector<8x8xf32>
    %c66 = arith.constant 66 : index
    %257 = memref.load %arg3[%c66] : memref<108xf32, #tpu.memory_space<smem>>
    %258 = vector.broadcast %257 : f32 to vector<8x8xf32>
    %259 = arith.mulf %258, %248 : vector<8x8xf32>
    %260 = arith.addf %240, %259 : vector<8x8xf32>
    %c93 = arith.constant 93 : index
    %261 = memref.load %arg3[%c93] : memref<108xf32, #tpu.memory_space<smem>>
    %262 = vector.broadcast %261 : f32 to vector<8x8xf32>
    %263 = arith.mulf %262, %248 : vector<8x8xf32>
    %264 = arith.addf %244, %263 : vector<8x8xf32>
    %c1_i32_52 = arith.constant 1 : i32
    %265 = arith.addi %0, %c1_i32_52 : i32
    %c0_53 = arith.constant 0 : index
    %c1_54 = arith.constant 1 : index
    %266 = arith.index_cast %265 : i32 to index
    %c1_55 = arith.constant 1 : index
    %267 = vector.load %arg2[%c0_53, %c1_54, %266, %c1_55] : memref<1x3x10x10xf32, #tpu.memory_space<vmem>>, vector<1x1x8x8xf32>
    %268 = vector.shape_cast %267 : vector<1x1x8x8xf32> to vector<8x8xf32>
    %c13 = arith.constant 13 : index
    %269 = memref.load %arg3[%c13] : memref<108xf32, #tpu.memory_space<smem>>
    %270 = vector.broadcast %269 : f32 to vector<8x8xf32>
    %271 = arith.mulf %270, %268 : vector<8x8xf32>
    %272 = arith.addf %252, %271 : vector<8x8xf32>
    %c40 = arith.constant 40 : index
    %273 = memref.load %arg3[%c40] : memref<108xf32, #tpu.memory_space<smem>>
    %274 = vector.broadcast %273 : f32 to vector<8x8xf32>
    %275 = arith.mulf %274, %268 : vector<8x8xf32>
    %276 = arith.addf %256, %275 : vector<8x8xf32>
    %c67 = arith.constant 67 : index
    %277 = memref.load %arg3[%c67] : memref<108xf32, #tpu.memory_space<smem>>
    %278 = vector.broadcast %277 : f32 to vector<8x8xf32>
    %279 = arith.mulf %278, %268 : vector<8x8xf32>
    %280 = arith.addf %260, %279 : vector<8x8xf32>
    %c94 = arith.constant 94 : index
    %281 = memref.load %arg3[%c94] : memref<108xf32, #tpu.memory_space<smem>>
    %282 = vector.broadcast %281 : f32 to vector<8x8xf32>
    %283 = arith.mulf %282, %268 : vector<8x8xf32>
    %284 = arith.addf %264, %283 : vector<8x8xf32>
    %c1_i32_56 = arith.constant 1 : i32
    %285 = arith.addi %0, %c1_i32_56 : i32
    %c0_57 = arith.constant 0 : index
    %c1_58 = arith.constant 1 : index
    %286 = arith.index_cast %285 : i32 to index
    %c2_59 = arith.constant 2 : index
    %287 = vector.load %arg2[%c0_57, %c1_58, %286, %c2_59] : memref<1x3x10x10xf32, #tpu.memory_space<vmem>>, vector<1x1x8x8xf32>
    %288 = vector.shape_cast %287 : vector<1x1x8x8xf32> to vector<8x8xf32>
    %c14 = arith.constant 14 : index
    %289 = memref.load %arg3[%c14] : memref<108xf32, #tpu.memory_space<smem>>
    %290 = vector.broadcast %289 : f32 to vector<8x8xf32>
    %291 = arith.mulf %290, %288 : vector<8x8xf32>
    %292 = arith.addf %272, %291 : vector<8x8xf32>
    %c41 = arith.constant 41 : index
    %293 = memref.load %arg3[%c41] : memref<108xf32, #tpu.memory_space<smem>>
    %294 = vector.broadcast %293 : f32 to vector<8x8xf32>
    %295 = arith.mulf %294, %288 : vector<8x8xf32>
    %296 = arith.addf %276, %295 : vector<8x8xf32>
    %c68 = arith.constant 68 : index
    %297 = memref.load %arg3[%c68] : memref<108xf32, #tpu.memory_space<smem>>
    %298 = vector.broadcast %297 : f32 to vector<8x8xf32>
    %299 = arith.mulf %298, %288 : vector<8x8xf32>
    %300 = arith.addf %280, %299 : vector<8x8xf32>
    %c95 = arith.constant 95 : index
    %301 = memref.load %arg3[%c95] : memref<108xf32, #tpu.memory_space<smem>>
    %302 = vector.broadcast %301 : f32 to vector<8x8xf32>
    %303 = arith.mulf %302, %288 : vector<8x8xf32>
    %304 = arith.addf %284, %303 : vector<8x8xf32>
    %c2_i32_60 = arith.constant 2 : i32
    %305 = arith.addi %0, %c2_i32_60 : i32
    %c0_61 = arith.constant 0 : index
    %c1_62 = arith.constant 1 : index
    %306 = arith.index_cast %305 : i32 to index
    %c0_63 = arith.constant 0 : index
    %307 = vector.load %arg2[%c0_61, %c1_62, %306, %c0_63] : memref<1x3x10x10xf32, #tpu.memory_space<vmem>>, vector<1x1x8x8xf32>
    %308 = vector.shape_cast %307 : vector<1x1x8x8xf32> to vector<8x8xf32>
    %c15 = arith.constant 15 : index
    %309 = memref.load %arg3[%c15] : memref<108xf32, #tpu.memory_space<smem>>
    %310 = vector.broadcast %309 : f32 to vector<8x8xf32>
    %311 = arith.mulf %310, %308 : vector<8x8xf32>
    %312 = arith.addf %292, %311 : vector<8x8xf32>
    %c42 = arith.constant 42 : index
    %313 = memref.load %arg3[%c42] : memref<108xf32, #tpu.memory_space<smem>>
    %314 = vector.broadcast %313 : f32 to vector<8x8xf32>
    %315 = arith.mulf %314, %308 : vector<8x8xf32>
    %316 = arith.addf %296, %315 : vector<8x8xf32>
    %c69 = arith.constant 69 : index
    %317 = memref.load %arg3[%c69] : memref<108xf32, #tpu.memory_space<smem>>
    %318 = vector.broadcast %317 : f32 to vector<8x8xf32>
    %319 = arith.mulf %318, %308 : vector<8x8xf32>
    %320 = arith.addf %300, %319 : vector<8x8xf32>
    %c96 = arith.constant 96 : index
    %321 = memref.load %arg3[%c96] : memref<108xf32, #tpu.memory_space<smem>>
    %322 = vector.broadcast %321 : f32 to vector<8x8xf32>
    %323 = arith.mulf %322, %308 : vector<8x8xf32>
    %324 = arith.addf %304, %323 : vector<8x8xf32>
    %c2_i32_64 = arith.constant 2 : i32
    %325 = arith.addi %0, %c2_i32_64 : i32
    %c0_65 = arith.constant 0 : index
    %c1_66 = arith.constant 1 : index
    %326 = arith.index_cast %325 : i32 to index
    %c1_67 = arith.constant 1 : index
    %327 = vector.load %arg2[%c0_65, %c1_66, %326, %c1_67] : memref<1x3x10x10xf32, #tpu.memory_space<vmem>>, vector<1x1x8x8xf32>
    %328 = vector.shape_cast %327 : vector<1x1x8x8xf32> to vector<8x8xf32>
    %c16 = arith.constant 16 : index
    %329 = memref.load %arg3[%c16] : memref<108xf32, #tpu.memory_space<smem>>
    %330 = vector.broadcast %329 : f32 to vector<8x8xf32>
    %331 = arith.mulf %330, %328 : vector<8x8xf32>
    %332 = arith.addf %312, %331 : vector<8x8xf32>
    %c43 = arith.constant 43 : index
    %333 = memref.load %arg3[%c43] : memref<108xf32, #tpu.memory_space<smem>>
    %334 = vector.broadcast %333 : f32 to vector<8x8xf32>
    %335 = arith.mulf %334, %328 : vector<8x8xf32>
    %336 = arith.addf %316, %335 : vector<8x8xf32>
    %c70 = arith.constant 70 : index
    %337 = memref.load %arg3[%c70] : memref<108xf32, #tpu.memory_space<smem>>
    %338 = vector.broadcast %337 : f32 to vector<8x8xf32>
    %339 = arith.mulf %338, %328 : vector<8x8xf32>
    %340 = arith.addf %320, %339 : vector<8x8xf32>
    %c97 = arith.constant 97 : index
    %341 = memref.load %arg3[%c97] : memref<108xf32, #tpu.memory_space<smem>>
    %342 = vector.broadcast %341 : f32 to vector<8x8xf32>
    %343 = arith.mulf %342, %328 : vector<8x8xf32>
    %344 = arith.addf %324, %343 : vector<8x8xf32>
    %c2_i32_68 = arith.constant 2 : i32
    %345 = arith.addi %0, %c2_i32_68 : i32
    %c0_69 = arith.constant 0 : index
    %c1_70 = arith.constant 1 : index
    %346 = arith.index_cast %345 : i32 to index
    %c2_71 = arith.constant 2 : index
    %347 = vector.load %arg2[%c0_69, %c1_70, %346, %c2_71] : memref<1x3x10x10xf32, #tpu.memory_space<vmem>>, vector<1x1x8x8xf32>
    %348 = vector.shape_cast %347 : vector<1x1x8x8xf32> to vector<8x8xf32>
    %c17 = arith.constant 17 : index
    %349 = memref.load %arg3[%c17] : memref<108xf32, #tpu.memory_space<smem>>
    %350 = vector.broadcast %349 : f32 to vector<8x8xf32>
    %351 = arith.mulf %350, %348 : vector<8x8xf32>
    %352 = arith.addf %332, %351 : vector<8x8xf32>
    %c44 = arith.constant 44 : index
    %353 = memref.load %arg3[%c44] : memref<108xf32, #tpu.memory_space<smem>>
    %354 = vector.broadcast %353 : f32 to vector<8x8xf32>
    %355 = arith.mulf %354, %348 : vector<8x8xf32>
    %356 = arith.addf %336, %355 : vector<8x8xf32>
    %c71 = arith.constant 71 : index
    %357 = memref.load %arg3[%c71] : memref<108xf32, #tpu.memory_space<smem>>
    %358 = vector.broadcast %357 : f32 to vector<8x8xf32>
    %359 = arith.mulf %358, %348 : vector<8x8xf32>
    %360 = arith.addf %340, %359 : vector<8x8xf32>
    %c98 = arith.constant 98 : index
    %361 = memref.load %arg3[%c98] : memref<108xf32, #tpu.memory_space<smem>>
    %362 = vector.broadcast %361 : f32 to vector<8x8xf32>
    %363 = arith.mulf %362, %348 : vector<8x8xf32>
    %364 = arith.addf %344, %363 : vector<8x8xf32>
    %c0_i32_72 = arith.constant 0 : i32
    %365 = arith.addi %0, %c0_i32_72 : i32
    %c0_73 = arith.constant 0 : index
    %c2_74 = arith.constant 2 : index
    %366 = arith.index_cast %365 : i32 to index
    %c0_75 = arith.constant 0 : index
    %367 = vector.load %arg2[%c0_73, %c2_74, %366, %c0_75] : memref<1x3x10x10xf32, #tpu.memory_space<vmem>>, vector<1x1x8x8xf32>
    %368 = vector.shape_cast %367 : vector<1x1x8x8xf32> to vector<8x8xf32>
    %c18 = arith.constant 18 : index
    %369 = memref.load %arg3[%c18] : memref<108xf32, #tpu.memory_space<smem>>
    %370 = vector.broadcast %369 : f32 to vector<8x8xf32>
    %371 = arith.mulf %370, %368 : vector<8x8xf32>
    %372 = arith.addf %352, %371 : vector<8x8xf32>
    %c45 = arith.constant 45 : index
    %373 = memref.load %arg3[%c45] : memref<108xf32, #tpu.memory_space<smem>>
    %374 = vector.broadcast %373 : f32 to vector<8x8xf32>
    %375 = arith.mulf %374, %368 : vector<8x8xf32>
    %376 = arith.addf %356, %375 : vector<8x8xf32>
    %c72 = arith.constant 72 : index
    %377 = memref.load %arg3[%c72] : memref<108xf32, #tpu.memory_space<smem>>
    %378 = vector.broadcast %377 : f32 to vector<8x8xf32>
    %379 = arith.mulf %378, %368 : vector<8x8xf32>
    %380 = arith.addf %360, %379 : vector<8x8xf32>
    %c99 = arith.constant 99 : index
    %381 = memref.load %arg3[%c99] : memref<108xf32, #tpu.memory_space<smem>>
    %382 = vector.broadcast %381 : f32 to vector<8x8xf32>
    %383 = arith.mulf %382, %368 : vector<8x8xf32>
    %384 = arith.addf %364, %383 : vector<8x8xf32>
    %c0_i32_76 = arith.constant 0 : i32
    %385 = arith.addi %0, %c0_i32_76 : i32
    %c0_77 = arith.constant 0 : index
    %c2_78 = arith.constant 2 : index
    %386 = arith.index_cast %385 : i32 to index
    %c1_79 = arith.constant 1 : index
    %387 = vector.load %arg2[%c0_77, %c2_78, %386, %c1_79] : memref<1x3x10x10xf32, #tpu.memory_space<vmem>>, vector<1x1x8x8xf32>
    %388 = vector.shape_cast %387 : vector<1x1x8x8xf32> to vector<8x8xf32>
    %c19 = arith.constant 19 : index
    %389 = memref.load %arg3[%c19] : memref<108xf32, #tpu.memory_space<smem>>
    %390 = vector.broadcast %389 : f32 to vector<8x8xf32>
    %391 = arith.mulf %390, %388 : vector<8x8xf32>
    %392 = arith.addf %372, %391 : vector<8x8xf32>
    %c46 = arith.constant 46 : index
    %393 = memref.load %arg3[%c46] : memref<108xf32, #tpu.memory_space<smem>>
    %394 = vector.broadcast %393 : f32 to vector<8x8xf32>
    %395 = arith.mulf %394, %388 : vector<8x8xf32>
    %396 = arith.addf %376, %395 : vector<8x8xf32>
    %c73 = arith.constant 73 : index
    %397 = memref.load %arg3[%c73] : memref<108xf32, #tpu.memory_space<smem>>
    %398 = vector.broadcast %397 : f32 to vector<8x8xf32>
    %399 = arith.mulf %398, %388 : vector<8x8xf32>
    %400 = arith.addf %380, %399 : vector<8x8xf32>
    %c100 = arith.constant 100 : index
    %401 = memref.load %arg3[%c100] : memref<108xf32, #tpu.memory_space<smem>>
    %402 = vector.broadcast %401 : f32 to vector<8x8xf32>
    %403 = arith.mulf %402, %388 : vector<8x8xf32>
    %404 = arith.addf %384, %403 : vector<8x8xf32>
    %c0_i32_80 = arith.constant 0 : i32
    %405 = arith.addi %0, %c0_i32_80 : i32
    %c0_81 = arith.constant 0 : index
    %c2_82 = arith.constant 2 : index
    %406 = arith.index_cast %405 : i32 to index
    %c2_83 = arith.constant 2 : index
    %407 = vector.load %arg2[%c0_81, %c2_82, %406, %c2_83] : memref<1x3x10x10xf32, #tpu.memory_space<vmem>>, vector<1x1x8x8xf32>
    %408 = vector.shape_cast %407 : vector<1x1x8x8xf32> to vector<8x8xf32>
    %c20 = arith.constant 20 : index
    %409 = memref.load %arg3[%c20] : memref<108xf32, #tpu.memory_space<smem>>
    %410 = vector.broadcast %409 : f32 to vector<8x8xf32>
    %411 = arith.mulf %410, %408 : vector<8x8xf32>
    %412 = arith.addf %392, %411 : vector<8x8xf32>
    %c47 = arith.constant 47 : index
    %413 = memref.load %arg3[%c47] : memref<108xf32, #tpu.memory_space<smem>>
    %414 = vector.broadcast %413 : f32 to vector<8x8xf32>
    %415 = arith.mulf %414, %408 : vector<8x8xf32>
    %416 = arith.addf %396, %415 : vector<8x8xf32>
    %c74 = arith.constant 74 : index
    %417 = memref.load %arg3[%c74] : memref<108xf32, #tpu.memory_space<smem>>
    %418 = vector.broadcast %417 : f32 to vector<8x8xf32>
    %419 = arith.mulf %418, %408 : vector<8x8xf32>
    %420 = arith.addf %400, %419 : vector<8x8xf32>
    %c101 = arith.constant 101 : index
    %421 = memref.load %arg3[%c101] : memref<108xf32, #tpu.memory_space<smem>>
    %422 = vector.broadcast %421 : f32 to vector<8x8xf32>
    %423 = arith.mulf %422, %408 : vector<8x8xf32>
    %424 = arith.addf %404, %423 : vector<8x8xf32>
    %c1_i32_84 = arith.constant 1 : i32
    %425 = arith.addi %0, %c1_i32_84 : i32
    %c0_85 = arith.constant 0 : index
    %c2_86 = arith.constant 2 : index
    %426 = arith.index_cast %425 : i32 to index
    %c0_87 = arith.constant 0 : index
    %427 = vector.load %arg2[%c0_85, %c2_86, %426, %c0_87] : memref<1x3x10x10xf32, #tpu.memory_space<vmem>>, vector<1x1x8x8xf32>
    %428 = vector.shape_cast %427 : vector<1x1x8x8xf32> to vector<8x8xf32>
    %c21 = arith.constant 21 : index
    %429 = memref.load %arg3[%c21] : memref<108xf32, #tpu.memory_space<smem>>
    %430 = vector.broadcast %429 : f32 to vector<8x8xf32>
    %431 = arith.mulf %430, %428 : vector<8x8xf32>
    %432 = arith.addf %412, %431 : vector<8x8xf32>
    %c48 = arith.constant 48 : index
    %433 = memref.load %arg3[%c48] : memref<108xf32, #tpu.memory_space<smem>>
    %434 = vector.broadcast %433 : f32 to vector<8x8xf32>
    %435 = arith.mulf %434, %428 : vector<8x8xf32>
    %436 = arith.addf %416, %435 : vector<8x8xf32>
    %c75 = arith.constant 75 : index
    %437 = memref.load %arg3[%c75] : memref<108xf32, #tpu.memory_space<smem>>
    %438 = vector.broadcast %437 : f32 to vector<8x8xf32>
    %439 = arith.mulf %438, %428 : vector<8x8xf32>
    %440 = arith.addf %420, %439 : vector<8x8xf32>
    %c102 = arith.constant 102 : index
    %441 = memref.load %arg3[%c102] : memref<108xf32, #tpu.memory_space<smem>>
    %442 = vector.broadcast %441 : f32 to vector<8x8xf32>
    %443 = arith.mulf %442, %428 : vector<8x8xf32>
    %444 = arith.addf %424, %443 : vector<8x8xf32>
    %c1_i32_88 = arith.constant 1 : i32
    %445 = arith.addi %0, %c1_i32_88 : i32
    %c0_89 = arith.constant 0 : index
    %c2_90 = arith.constant 2 : index
    %446 = arith.index_cast %445 : i32 to index
    %c1_91 = arith.constant 1 : index
    %447 = vector.load %arg2[%c0_89, %c2_90, %446, %c1_91] : memref<1x3x10x10xf32, #tpu.memory_space<vmem>>, vector<1x1x8x8xf32>
    %448 = vector.shape_cast %447 : vector<1x1x8x8xf32> to vector<8x8xf32>
    %c22 = arith.constant 22 : index
    %449 = memref.load %arg3[%c22] : memref<108xf32, #tpu.memory_space<smem>>
    %450 = vector.broadcast %449 : f32 to vector<8x8xf32>
    %451 = arith.mulf %450, %448 : vector<8x8xf32>
    %452 = arith.addf %432, %451 : vector<8x8xf32>
    %c49 = arith.constant 49 : index
    %453 = memref.load %arg3[%c49] : memref<108xf32, #tpu.memory_space<smem>>
    %454 = vector.broadcast %453 : f32 to vector<8x8xf32>
    %455 = arith.mulf %454, %448 : vector<8x8xf32>
    %456 = arith.addf %436, %455 : vector<8x8xf32>
    %c76 = arith.constant 76 : index
    %457 = memref.load %arg3[%c76] : memref<108xf32, #tpu.memory_space<smem>>
    %458 = vector.broadcast %457 : f32 to vector<8x8xf32>
    %459 = arith.mulf %458, %448 : vector<8x8xf32>
    %460 = arith.addf %440, %459 : vector<8x8xf32>
    %c103 = arith.constant 103 : index
    %461 = memref.load %arg3[%c103] : memref<108xf32, #tpu.memory_space<smem>>
    %462 = vector.broadcast %461 : f32 to vector<8x8xf32>
    %463 = arith.mulf %462, %448 : vector<8x8xf32>
    %464 = arith.addf %444, %463 : vector<8x8xf32>
    %c1_i32_92 = arith.constant 1 : i32
    %465 = arith.addi %0, %c1_i32_92 : i32
    %c0_93 = arith.constant 0 : index
    %c2_94 = arith.constant 2 : index
    %466 = arith.index_cast %465 : i32 to index
    %c2_95 = arith.constant 2 : index
    %467 = vector.load %arg2[%c0_93, %c2_94, %466, %c2_95] : memref<1x3x10x10xf32, #tpu.memory_space<vmem>>, vector<1x1x8x8xf32>
    %468 = vector.shape_cast %467 : vector<1x1x8x8xf32> to vector<8x8xf32>
    %c23 = arith.constant 23 : index
    %469 = memref.load %arg3[%c23] : memref<108xf32, #tpu.memory_space<smem>>
    %470 = vector.broadcast %469 : f32 to vector<8x8xf32>
    %471 = arith.mulf %470, %468 : vector<8x8xf32>
    %472 = arith.addf %452, %471 : vector<8x8xf32>
    %c50 = arith.constant 50 : index
    %473 = memref.load %arg3[%c50] : memref<108xf32, #tpu.memory_space<smem>>
    %474 = vector.broadcast %473 : f32 to vector<8x8xf32>
    %475 = arith.mulf %474, %468 : vector<8x8xf32>
    %476 = arith.addf %456, %475 : vector<8x8xf32>
    %c77 = arith.constant 77 : index
    %477 = memref.load %arg3[%c77] : memref<108xf32, #tpu.memory_space<smem>>
    %478 = vector.broadcast %477 : f32 to vector<8x8xf32>
    %479 = arith.mulf %478, %468 : vector<8x8xf32>
    %480 = arith.addf %460, %479 : vector<8x8xf32>
    %c104 = arith.constant 104 : index
    %481 = memref.load %arg3[%c104] : memref<108xf32, #tpu.memory_space<smem>>
    %482 = vector.broadcast %481 : f32 to vector<8x8xf32>
    %483 = arith.mulf %482, %468 : vector<8x8xf32>
    %484 = arith.addf %464, %483 : vector<8x8xf32>
    %c2_i32_96 = arith.constant 2 : i32
    %485 = arith.addi %0, %c2_i32_96 : i32
    %c0_97 = arith.constant 0 : index
    %c2_98 = arith.constant 2 : index
    %486 = arith.index_cast %485 : i32 to index
    %c0_99 = arith.constant 0 : index
    %487 = vector.load %arg2[%c0_97, %c2_98, %486, %c0_99] : memref<1x3x10x10xf32, #tpu.memory_space<vmem>>, vector<1x1x8x8xf32>
    %488 = vector.shape_cast %487 : vector<1x1x8x8xf32> to vector<8x8xf32>
    %c24 = arith.constant 24 : index
    %489 = memref.load %arg3[%c24] : memref<108xf32, #tpu.memory_space<smem>>
    %490 = vector.broadcast %489 : f32 to vector<8x8xf32>
    %491 = arith.mulf %490, %488 : vector<8x8xf32>
    %492 = arith.addf %472, %491 : vector<8x8xf32>
    %c51 = arith.constant 51 : index
    %493 = memref.load %arg3[%c51] : memref<108xf32, #tpu.memory_space<smem>>
    %494 = vector.broadcast %493 : f32 to vector<8x8xf32>
    %495 = arith.mulf %494, %488 : vector<8x8xf32>
    %496 = arith.addf %476, %495 : vector<8x8xf32>
    %c78 = arith.constant 78 : index
    %497 = memref.load %arg3[%c78] : memref<108xf32, #tpu.memory_space<smem>>
    %498 = vector.broadcast %497 : f32 to vector<8x8xf32>
    %499 = arith.mulf %498, %488 : vector<8x8xf32>
    %500 = arith.addf %480, %499 : vector<8x8xf32>
    %c105 = arith.constant 105 : index
    %501 = memref.load %arg3[%c105] : memref<108xf32, #tpu.memory_space<smem>>
    %502 = vector.broadcast %501 : f32 to vector<8x8xf32>
    %503 = arith.mulf %502, %488 : vector<8x8xf32>
    %504 = arith.addf %484, %503 : vector<8x8xf32>
    %c2_i32_100 = arith.constant 2 : i32
    %505 = arith.addi %0, %c2_i32_100 : i32
    %c0_101 = arith.constant 0 : index
    %c2_102 = arith.constant 2 : index
    %506 = arith.index_cast %505 : i32 to index
    %c1_103 = arith.constant 1 : index
    %507 = vector.load %arg2[%c0_101, %c2_102, %506, %c1_103] : memref<1x3x10x10xf32, #tpu.memory_space<vmem>>, vector<1x1x8x8xf32>
    %508 = vector.shape_cast %507 : vector<1x1x8x8xf32> to vector<8x8xf32>
    %c25 = arith.constant 25 : index
    %509 = memref.load %arg3[%c25] : memref<108xf32, #tpu.memory_space<smem>>
    %510 = vector.broadcast %509 : f32 to vector<8x8xf32>
    %511 = arith.mulf %510, %508 : vector<8x8xf32>
    %512 = arith.addf %492, %511 : vector<8x8xf32>
    %c52 = arith.constant 52 : index
    %513 = memref.load %arg3[%c52] : memref<108xf32, #tpu.memory_space<smem>>
    %514 = vector.broadcast %513 : f32 to vector<8x8xf32>
    %515 = arith.mulf %514, %508 : vector<8x8xf32>
    %516 = arith.addf %496, %515 : vector<8x8xf32>
    %c79 = arith.constant 79 : index
    %517 = memref.load %arg3[%c79] : memref<108xf32, #tpu.memory_space<smem>>
    %518 = vector.broadcast %517 : f32 to vector<8x8xf32>
    %519 = arith.mulf %518, %508 : vector<8x8xf32>
    %520 = arith.addf %500, %519 : vector<8x8xf32>
    %c106 = arith.constant 106 : index
    %521 = memref.load %arg3[%c106] : memref<108xf32, #tpu.memory_space<smem>>
    %522 = vector.broadcast %521 : f32 to vector<8x8xf32>
    %523 = arith.mulf %522, %508 : vector<8x8xf32>
    %524 = arith.addf %504, %523 : vector<8x8xf32>
    %c2_i32_104 = arith.constant 2 : i32
    %525 = arith.addi %0, %c2_i32_104 : i32
    %c0_105 = arith.constant 0 : index
    %c2_106 = arith.constant 2 : index
    %526 = arith.index_cast %525 : i32 to index
    %c2_107 = arith.constant 2 : index
    %527 = vector.load %arg2[%c0_105, %c2_106, %526, %c2_107] : memref<1x3x10x10xf32, #tpu.memory_space<vmem>>, vector<1x1x8x8xf32>
    %528 = vector.shape_cast %527 : vector<1x1x8x8xf32> to vector<8x8xf32>
    %c26 = arith.constant 26 : index
    %529 = memref.load %arg3[%c26] : memref<108xf32, #tpu.memory_space<smem>>
    %530 = vector.broadcast %529 : f32 to vector<8x8xf32>
    %531 = arith.mulf %530, %528 : vector<8x8xf32>
    %532 = arith.addf %512, %531 : vector<8x8xf32>
    %c53 = arith.constant 53 : index
    %533 = memref.load %arg3[%c53] : memref<108xf32, #tpu.memory_space<smem>>
    %534 = vector.broadcast %533 : f32 to vector<8x8xf32>
    %535 = arith.mulf %534, %528 : vector<8x8xf32>
    %536 = arith.addf %516, %535 : vector<8x8xf32>
    %c80 = arith.constant 80 : index
    %537 = memref.load %arg3[%c80] : memref<108xf32, #tpu.memory_space<smem>>
    %538 = vector.broadcast %537 : f32 to vector<8x8xf32>
    %539 = arith.mulf %538, %528 : vector<8x8xf32>
    %540 = arith.addf %520, %539 : vector<8x8xf32>
    %c107 = arith.constant 107 : index
    %541 = memref.load %arg3[%c107] : memref<108xf32, #tpu.memory_space<smem>>
    %542 = vector.broadcast %541 : f32 to vector<8x8xf32>
    %543 = arith.mulf %542, %528 : vector<8x8xf32>
    %544 = arith.addf %524, %543 : vector<8x8xf32>
    %c0_108 = arith.constant 0 : index
    %545 = memref.load %arg4[%c0_108] : memref<4xf32, #tpu.memory_space<smem>>
    %546 = vector.broadcast %545 : f32 to vector<8x8xf32>
    %547 = arith.addf %532, %546 : vector<8x8xf32>
    %c0_109 = arith.constant 0 : index
    %c0_110 = arith.constant 0 : index
    %c0_111 = arith.constant 0 : index
    %c0_112 = arith.constant 0 : index
    %548 = vector.load %arg5[%c0_109, %c0_110, %c0_111, %c0_112] : memref<1x4x8x8xf32, #tpu.memory_space<vmem>>, vector<1x1x8x8xf32>
    %549 = vector.shape_cast %548 : vector<1x1x8x8xf32> to vector<8x8xf32>
    %550 = vector.shape_cast %547 : vector<8x8xf32> to vector<1x1x8x8xf32>
    tpu.vector_store %arg5[%c0_109, %c0_110, %c0_111, %c0_112], %550 {strides = array<i32>} : memref<1x4x8x8xf32, #tpu.memory_space<vmem>>, vector<1x1x8x8xf32>,
    %c1_113 = arith.constant 1 : index
    %551 = memref.load %arg4[%c1_113] : memref<4xf32, #tpu.memory_space<smem>>
    %552 = vector.broadcast %551 : f32 to vector<8x8xf32>
    %553 = arith.addf %536, %552 : vector<8x8xf32>
    %c0_114 = arith.constant 0 : index
    %c1_115 = arith.constant 1 : index
    %c0_116 = arith.constant 0 : index
    %c0_117 = arith.constant 0 : index
    %554 = vector.load %arg5[%c0_114, %c1_115, %c0_116, %c0_117] : memref<1x4x8x8xf32, #tpu.memory_space<vmem>>, vector<1x1x8x8xf32>
    %555 = vector.shape_cast %554 : vector<1x1x8x8xf32> to vector<8x8xf32>
    %556 = vector.shape_cast %553 : vector<8x8xf32> to vector<1x1x8x8xf32>
    tpu.vector_store %arg5[%c0_114, %c1_115, %c0_116, %c0_117], %556 {strides = array<i32>} : memref<1x4x8x8xf32, #tpu.memory_space<vmem>>, vector<1x1x8x8xf32>,
    %c2_118 = arith.constant 2 : index
    %557 = memref.load %arg4[%c2_118] : memref<4xf32, #tpu.memory_space<smem>>
    %558 = vector.broadcast %557 : f32 to vector<8x8xf32>
    %559 = arith.addf %540, %558 : vector<8x8xf32>
    %c0_119 = arith.constant 0 : index
    %c2_120 = arith.constant 2 : index
    %c0_121 = arith.constant 0 : index
    %c0_122 = arith.constant 0 : index
    %560 = vector.load %arg5[%c0_119, %c2_120, %c0_121, %c0_122] : memref<1x4x8x8xf32, #tpu.memory_space<vmem>>, vector<1x1x8x8xf32>
    %561 = vector.shape_cast %560 : vector<1x1x8x8xf32> to vector<8x8xf32>
    %562 = vector.shape_cast %559 : vector<8x8xf32> to vector<1x1x8x8xf32>
    tpu.vector_store %arg5[%c0_119, %c2_120, %c0_121, %c0_122], %562 {strides = array<i32>} : memref<1x4x8x8xf32, #tpu.memory_space<vmem>>, vector<1x1x8x8xf32>,
    %c3_123 = arith.constant 3 : index
    %563 = memref.load %arg4[%c3_123] : memref<4xf32, #tpu.memory_space<smem>>
    %564 = vector.broadcast %563 : f32 to vector<8x8xf32>
    %565 = arith.addf %544, %564 : vector<8x8xf32>
    %c0_124 = arith.constant 0 : index
    %c3_125 = arith.constant 3 : index
    %c0_126 = arith.constant 0 : index
    %c0_127 = arith.constant 0 : index
    %566 = vector.load %arg5[%c0_124, %c3_125, %c0_126, %c0_127] : memref<1x4x8x8xf32, #tpu.memory_space<vmem>>, vector<1x1x8x8xf32>
    %567 = vector.shape_cast %566 : vector<1x1x8x8xf32> to vector<8x8xf32>
    %568 = vector.shape_cast %565 : vector<8x8xf32> to vector<1x1x8x8xf32>
    tpu.vector_store %arg5[%c0_124, %c3_125, %c0_126, %c0_127], %568 {strides = array<i32>} : memref<1x4x8x8xf32, #tpu.memory_space<vmem>>, vector<1x1x8x8xf32>,
    return
  }
  func.func @transform_0(%arg0: i32, %arg1: i32) -> (i32, i32, i32, i32) {
    %c0_i32 = arith.constant 0 : i32
    %c0_i32_0 = arith.constant 0 : i32
    %c0_i32_1 = arith.constant 0 : i32
    %c0_i32_2 = arith.constant 0 : i32
    return %arg0, %c0_i32, %c0_i32_0, %c0_i32_1 : i32, i32, i32, i32
  }
  func.func @transform_1(%arg0: i32, %arg1: i32) -> i32 {
    %c0_i32 = arith.constant 0 : i32
    %c0_i32_0 = arith.constant 0 : i32
    return %c0_i32 : i32
  }
  func.func @transform_2(%arg0: i32, %arg1: i32) -> i32 {
    %c0_i32 = arith.constant 0 : i32
    %c0_i32_0 = arith.constant 0 : i32
    return %c0_i32 : i32
  }
  func.func @transform_3(%arg0: i32, %arg1: i32) -> (i32, i32, i32, i32) {
    %c0_i32 = arith.constant 0 : i32
    %c0_i32_0 = arith.constant 0 : i32
    %c0_i32_1 = arith.constant 0 : i32
    return %arg0, %c0_i32, %arg1, %c0_i32_0 : i32, i32, i32, i32
  }
}

</mosaic_0001>

<bundles_post_ra>
// kernel: tpu_custom_call.1
= control target key start
LH: loop header
LB: loop body
LE: loop exit
PB: predicated region body
PF: predicated region fallthrough
CT: control target
= control target key end

     0   :  { %8 = vsyncpa [#allocation4], 0  ;;  %s1909_s0 = inlined_call_operand.vmem [shape: f32[2,3,10,10], index: 0, kind: input, shape index: {}]   ;;  %s1910_s1 = inlined_call_operand.vmem [shape: f32[108], index: 1, kind: input, shape index: {}]   ;;  %s1911_s2 = inlined_call_operand.vmem [shape: f32[4], index: 2, kind: input, shape index: {}]   ;;  %s1912_s3 = inlined_call_operand.hbm [shape: f32[2,4,8,8], index: 3, kind: output, shape index: {}]  }
   0x1   :  { %9 = vsyncpa [#allocation6], 0 }
   0x2   :  { %10 = vsyncpa [#allocation3], 0 }
   0x3   :  { %12 = vsyncpa [#allocation3 + $0x1], 0  ;;  %s1474_s12 = smov 0   ;;  %s1476_s13 = smov 0  }
   0x4   :  { %s1478_s14 = smov 0   ;;  %s1480_s15 = smov 0  }
   0x5   :  { %s1482_s16 = smov 0   ;;  %s1484_s17 = smov 0  }
   0x6 LB: > { %s1112_s18 = sadd.s32 4294967295, %s1445_s17   ;;  %s1113_s19 = sadd.s32 4294967294, %s1445_s17   ;;  %s1445_s17 = sphi %s1484_s17, %s18_s17   ;;  %s1441_s16 = sphi %s1482_s16, %s1930_s16   ;;  %s1437_s15 = sphi %s1480_s15, %s1929_s15   ;;  %s1433_s14 = sphi %s1478_s14, %s1928_s14   ;;  %s1429_s13 = sphi %s1476_s13, %s1927_s13   ;;  %s1425_s12 = sphi %s1474_s12, %s1926_s12  }
   0x7   : > { %s30_s20 = sadd.s32 1, %s1441_s16  ;;  %s107_s21 = sadd.s32 1, %s1433_s14 }
   0x8   : > { %p32_p0 = scmp.ge.s32.totalorder %s30_s20, 2  ;;  %p117_p1 = scmp.ne.s32.totalorder %s1433_s14, %s1429_s13 }
   0x9   : > { %p118_p2 = scmp.eq.s32.totalorder %s1112_s18, 1  ;;  %p123_p3 = scmp.ne.s32.totalorder %s1429_s13, %s1425_s12 }
   0xa   : > { %s1932_s20 = smov (%p32_p0, %s30_s20), 0  ;;  %p124_p5 = scmp.eq.s32.totalorder %s1113_s19, 1 }
   0xb   : > { %p1514_p4 = por %p118_p2, %p117_p1  ;;  %s102_s23 = ssub.s32 %s1441_s16, %s1932_s20 }
   0xc   : > { %p1114_p6 = scmp.ge.s32.totalorder %s1445_s17, 1  ;;  %p105_p7 = scmp.eq.s32.totalorder %s102_s23, 0 }
   0xd   : > { %s1917_s22 = scalar_select %p1514_p4, 1, 0 }
   0xe   : > { %p1521_p8 = por %p124_p5, %p123_p3  ;;  %p131_p9 = scmp.lt.s32.totalorder %s1445_s17, 3 }
   0xf   : > { %s1527_s25 = scalar_select %p105_p7, %s1433_s14, %s107_s21  }
  0x10   : > { %s1918_s24 = scalar_select %p1521_p8, 1, 0 }
  0x11   : > { %p1529_p10 = pnand %p1114_p6, %p131_p9  ;;  %p1533_p11 = scmp.eq.s32.totalorder %s1112_s18, 0 }
  0x12   : > { %s144_s30 = sshll.u32 %s1910_s1, 4  ;;  %s155_s6 = sshll.u32 %s1911_s2, 4  ;;  %s145_s30 = int_to_ptr.vmem [resolvable:$true] %s144_s30  ;;  %s156_s6 = int_to_ptr.vmem [resolvable:$true] %s155_s6 }
  0x13   : > { %s1919_s26 = scalar_select %p1529_p10, 1, 0 }
  0x14   : > { %s1920_s27 = scalar_select %p1533_p11, 1, 0 }
  0x15   : > { %p1261_p12 = pneg %p1529_p10  ;;  %s1331_s8 = scalar_lea.vmem %s145_s30, 16 }
  0x16   : > { %p1332_p0 = scmp.ne.s32.totalorder %s145_s30, %s1331_s8  ;;  %p1339_p5 = scmp.lt.s32.totalorder %s145_s30, %s145_s30 }
  0x17   : > { %p1547_p13 = pnand %p1533_p11, %p1261_p12  ;;  %p1340_p6 = scmp.lt.s32.totalorder %s1331_s8, %s1331_s8 }
  0x19   : > { %p1333_p1 = pneg %p1547_p13  ;;  %p1341_p7 = por %p1340_p6, %p1339_p5 }
  0x1b   : > { %p1334_p2 = pnand %p1333_p1, %p1332_p0 }
  0x1d   : > { %p1335_p3 = pneg %p1334_p2 }
  0x1f   : > { %p1342_p9 = pnand %p1341_p7, %p1335_p3 }
  0x21   : > { %1345 = shalt.err (!%p1342_p9)
}
  0x22   : > { %s1447_s9 = smov [#allocation2]   ;;  %s1346_s10 = scalar_lea.vmem %s156_s6, 16 }
  0x23   : > { %1264 = dma.vmem_to_smem (!%p1547_p13), %s145_s30, 16, %s1447_s9, [#allocation4]  }
  0x24   : > { %p1347_p12 = scmp.ne.s32.totalorder %s156_s6, %s1346_s10  ;;  %p1354_p11 = scmp.lt.s32.totalorder %s156_s6, %s156_s6 }
  0x25   : > { %p1355_p10 = scmp.lt.s32.totalorder %s1346_s10, %s1346_s10 }
  0x26   : > { %p1349_p8 = pnand %p1347_p12, %p1333_p1 }
  0x27   : > { %p1356_p0 = por %p1355_p10, %p1354_p11 }
  0x28   : > { %p1350_p4 = pneg %p1349_p8 }
  0x2a   : > { %p1357_p2 = pnand %p1356_p0, %p1350_p4 }
  0x2c   : > { %1360 = shalt.err (!%p1357_p2)
}
  0x2d   : > { %s1448_s11 = smov [#allocation5]   ;;  %p1922_p3 = scmp.ne.s32.totalorder %s1919_s26, 0 }
  0x2e   : > { %1267 = dma.vmem_to_smem (!%p1547_p13), %s156_s6, 16, %s1448_s11, [#allocation6]  }
  0x2f   : > { %176 = sbr.rel (%p1922_p3) target bundleno = 340 (0x154), region = 32  ;;  %p1923_p5 = scmp.ne.s32.totalorder (!%p1922_p3), %s1920_s27, 0 }
  0x34   : > { %1412 = dma.done.wait (%p1923_p5), [#allocation4], 16  }
  0x35   : > { %1414 = vsyncadd (%p1923_p5), [#allocation4], 4294967280 }
  0x36   : > { %1416 = dma.done.wait (%p1923_p5), [#allocation6], 16  }
  0x37   : > { %1418 = vsyncadd (%p1923_p5), [#allocation6], 4294967280 }
  0x38   : > { %186 = sfence }
  0x39   : > { %p205_p4 = scmp.lt.s32.totalorder %s1437_s15, 1  ;;  %s1128_s18 = sld [smem:[#allocation2 + $0x37]]  ;;  %vm960_vm0 = vcmask 64512  }
  0x3a   : > { %s1126_s21 = sld [smem:[#allocation2 + $0x1]]  ;;  %s1449_s8 = smov 127  }
  0x3b   : > { %s206_s19 = scalar_select %p205_p4, %s1437_s15, 1 }
  0x3c   : > { %s1129_s26 = sld [smem:[#allocation2 + $0x52]]  ;;  %p1924_p10 = scmp.ne.s32.totalorder %s1917_s22, 0 }
  0x3d   : > { %s1250_s23 = smul.u32 48, %s206_s19  ;;  %s1127_s28 = sld [smem:[#allocation2 + $0x1c]] }
  0x3e   : > { %s1131_s5 = sld [smem:[#allocation2 + $0x1d]]  ;;  %s1450_s19 = smov 126  }
  0x3f   : > { %s1572_s4 = scalar_lea.vmem %s1909_s0, %s1250_s23  ;;  %v246_v1 = vstv %s1128_s18  ;;  %s1130_s27 = sld [smem:[#allocation2 + $0x2]] }
  0x40   : > { %v1575_v0 = vld [vmem:[%s1572_s4] sm:$0xff]  ;;  %s1133_s6 = sld [smem:[#allocation2 + $0x53]]  ;;  %v230_v3 = vstv %s1126_s21  ;;  %v1628_v50 = vld [vmem:[%s1572_s4 + $0x10] sm:$0xff] }
  0x41   : > { %v247_v2 = vmul.f32 %v246_v1, %v1575_v0  ;;  %s1132_s7 = sld [smem:[#allocation2 + $0x38]]  ;;  %v231_v4 = vmul.f32 %v230_v3, %v1575_v0  ;;  %v1590_v16 = vld [vmem:[%s1572_s4 + $0x1] sm:$0xff] }
  0x42   : > { %v254_v5 = vstv %s1129_s26  ;;  %s1140_s9 = sld [smem:[#allocation2 + $0x1f]]  ;;  %v1609_v33 = vld [vmem:[%s1572_s4 + $0x2] sm:$0xff] }
  0x43   : > { %249 = vrot.lane.b32.xlu1 %v247_v2, %s1449_s8  ;;  %v255_v6 = vmul.f32 %v254_v5, %v1575_v0  ;;  %v238_v7 = vstv %s1127_s28  ;;  %233 = vrot.lane.b32.xlu0 %v231_v4, %s1449_s8  ;;  %s1139_s10 = sld [smem:[#allocation2 + $0x4]]  ;;  %v1647_v4 = vld [vmem:[%s1572_s4 + $0x11] sm:$0xff] }
  0x44   : > { %v239_v8 = vmul.f32 %v238_v7, %v1575_v0  ;;  %v270_v9 = vstv %s1131_s5  ;;  %s1142_s11 = sld [smem:[#allocation2 + $0x55]] }
  0x45   : > { %v262_v10 = vstv %s1130_s27  ;;  %v271_v11 = vmul.f32 %v270_v9, %v1575_v0  ;;  %s1141_s18 = sld [smem:[#allocation2 + $0x3a]] }
  0x46   : > { %v286_v12 = vstv %s1133_s6  ;;  %v263_v13 = vmul.f32 %v262_v10, %v1575_v0  ;;  %s1144_s21 = sld [smem:[#allocation2 + $0x20]] }
  0x47   : > { %257 = vrot.lane.b32.xlu1 %v255_v6, %s1449_s8  ;;  %241 = vrot.lane.b32.xlu0 %v239_v8, %s1449_s8  ;;  %v278_v14 = vstv %s1132_s7  ;;  %v287_v15 = vmul.f32 %v286_v12, %v1575_v0  ;;  %s1143_s23 = sld [smem:[#allocation2 + $0x5]] }
  0x48   : > { %v321_v17 = vstv %s1140_s9  ;;  %v279_v18 = vmul.f32 %v278_v14, %v1575_v0  ;;  %s1146_s26 = sld [smem:[#allocation2 + $0x56]] }
  0x49   : > { %v313_v19 = vstv %s1139_s10  ;;  %v322_v20 = vmul.f32 %v1590_v16, %v321_v17  ;;  %s1145_s28 = sld [smem:[#allocation2 + $0x3b]] }
  0x4a   : > { %v337_v21 = vstv %s1142_s11  ;;  %v314_v22 = vmul.f32 %v1590_v16, %v313_v19  ;;  %s1153_s29 = sld [smem:[#allocation2 + $0x22]] }
  0x4b   : > { %273 = vrot.lane.b32.xlu1 %v271_v11, %s1450_s19  ;;  %265 = vrot.lane.b32.xlu0 %v263_v13, %s1450_s19  ;;  %v329_v23 = vstv %s1141_s18  ;;  %v338_v24 = vmul.f32 %v1590_v16, %v337_v21  ;;  %s1152_s30 = sld [smem:[#allocation2 + $0x7]] }
  0x4c   : > { %v353_v25 = vstv %s1144_s21  ;;  %v330_v26 = vmul.f32 %v1590_v16, %v329_v23  ;;  %s1155_s5 = sld [smem:[#allocation2 + $0x58]] }
  0x4d   : > { %v345_v27 = vstv %s1143_s23  ;;  %v354_v28 = vmul.f32 %v1590_v16, %v353_v25  ;;  %s1154_s27 = sld [smem:[#allocation2 + $0x3d]] }
  0x4e   : > { %v369_v29 = vstv %s1146_s26  ;;  %v346_v30 = vmul.f32 %v1590_v16, %v345_v27  ;;  %s1157_s6 = sld [smem:[#allocation2 + $0x23]] }
  0x4f   : > { %289 = vrot.lane.b32.xlu1 %v287_v15, %s1450_s19  ;;  %281 = vrot.lane.b32.xlu0 %v279_v18, %s1450_s19  ;;  %v361_v31 = vstv %s1145_s28  ;;  %v370_v32 = vmul.f32 %v1590_v16, %v369_v29  ;;  %s1156_s7 = sld [smem:[#allocation2 + $0x8]] }
  0x50   : > { %v404_v34 = vstv %s1153_s29  ;;  %v362_v35 = vmul.f32 %v1590_v16, %v361_v31  ;;  %s1159_s9 = sld [smem:[#allocation2 + $0x59]] }
  0x51   : > { %v396_v36 = vstv %s1152_s30  ;;  %v405_v37 = vmul.f32 %v1609_v33, %v404_v34  ;;  %s1158_s10 = sld [smem:[#allocation2 + $0x3e]] }
  0x52   : > { %v420_v38 = vstv %s1155_s5  ;;  %v397_v39 = vmul.f32 %v1609_v33, %v396_v36  ;;  %s1166_s11 = sld [smem:[#allocation2 + $0x25]] }
  0x53   : > { %324 = vrot.lane.b32.xlu1 %v322_v20, %s1449_s8  ;;  %316 = vrot.lane.b32.xlu0 %v314_v22, %s1449_s8  ;;  %v412_v40 = vstv %s1154_s27  ;;  %v421_v41 = vmul.f32 %v1609_v33, %v420_v38  ;;  %s1165_s18 = sld [smem:[#allocation2 + $0xa]]  ;;  %v1666_v22 = vld [vmem:[%s1572_s4 + $0x12] sm:$0xff] }
  0x54   : > { %v436_v42 = vstv %s1157_s6  ;;  %v413_v43 = vmul.f32 %v1609_v33, %v412_v40  ;;  %s1168_s21 = sld [smem:[#allocation2 + $0x5b]]  ;;  %v1685_v40 = vld [vmem:[%s1572_s4 + $0x20] sm:$0xff] }
  0x55   : > { %v428_v44 = vstv %s1156_s7  ;;  %v437_v45 = vmul.f32 %v1609_v33, %v436_v42  ;;  %s1167_s23 = sld [smem:[#allocation2 + $0x40]] }
  0x56   : > { %v452_v46 = vstv %s1159_s9  ;;  %v429_v47 = vmul.f32 %v1609_v33, %v428_v44  ;;  %s1170_s26 = sld [smem:[#allocation2 + $0x26]] }
  0x57   : > { %340 = vrot.lane.b32.xlu1 %v338_v24, %s1449_s8  ;;  %332 = vrot.lane.b32.xlu0 %v330_v26, %s1449_s8  ;;  %v444_v48 = vstv %s1158_s10  ;;  %v453_v49 = vmul.f32 %v1609_v33, %v452_v46  ;;  %s1169_s28 = sld [smem:[#allocation2 + $0xb]] }
  0x58   : > { %v487_v51 = vstv %s1166_s11  ;;  %v445_v52 = vmul.f32 %v1609_v33, %v444_v48  ;;  %s1172_s29 = sld [smem:[#allocation2 + $0x5c]] }
  0x59   : > { %v479_v53 = vstv %s1165_s18  ;;  %v488_v54 = vmul.f32 %v1628_v50, %v487_v51  ;;  %s1171_s30 = sld [smem:[#allocation2 + $0x41]] }
  0x5a   : > { %v503_v55 = vstv %s1168_s21  ;;  %v480_v56 = vmul.f32 %v1628_v50, %v479_v53  ;;  %s1179_s5 = sld [smem:[#allocation2 + $0x28]] }
  0x5b   : > { %356 = vrot.lane.b32.xlu1 %v354_v28, %s1450_s19  ;;  %348 = vrot.lane.b32.xlu0 %v346_v30, %s1450_s19  ;;  %v495_v57 = vstv %s1167_s23  ;;  %v504_v58 = vmul.f32 %v1628_v50, %v503_v55  ;;  %s1178_s27 = sld [smem:[#allocation2 + $0xd]] }
  0x5c   : > { %v519_v59 = vstv %s1170_s26  ;;  %v496_v60 = vmul.f32 %v1628_v50, %v495_v57  ;;  %s1181_s6 = sld [smem:[#allocation2 + $0x5e]] }
  0x5d   : > { %v511_v61 = vstv %s1169_s28  ;;  %v520_v62 = vmul.f32 %v1628_v50, %v519_v59  ;;  %s1180_s7 = sld [smem:[#allocation2 + $0x43]] }
  0x5e   : > { %v535_v63 = vstv %s1172_s29  ;;  %v512_v1 = vmul.f32 %v1628_v50, %v511_v61  ;;  %s1183_s9 = sld [smem:[#allocation2 + $0x29]] }
  0x5f   : > { %372 = vrot.lane.b32.xlu1 %v370_v32, %s1450_s19  ;;  %364 = vrot.lane.b32.xlu0 %v362_v35, %s1450_s19  ;;  %v527_v2 = vstv %s1171_s30  ;;  %v536_v3 = vmul.f32 %v1628_v50, %v535_v63  ;;  %s1182_s10 = sld [smem:[#allocation2 + $0xe]] }
  0x60   : > { %v570_v5 = vstv %s1179_s5  ;;  %v528_v6 = vmul.f32 %v1628_v50, %v527_v2  ;;  %s1185_s11 = sld [smem:[#allocation2 + $0x5f]] }
  0x61   : > { %v562_v7 = vstv %s1178_s27  ;;  %v571_v8 = vmul.f32 %v1647_v4, %v570_v5  ;;  %s1184_s18 = sld [smem:[#allocation2 + $0x44]] }
  0x62   : > { %v586_v9 = vstv %s1181_s6  ;;  %v563_v10 = vmul.f32 %v1647_v4, %v562_v7  ;;  %s1192_s21 = sld [smem:[#allocation2 + $0x2b]] }
  0x63   : > { %407 = vrot.lane.b32.xlu1 %v405_v37, %s1449_s8  ;;  %399 = vrot.lane.b32.xlu0 %v397_v39, %s1449_s8  ;;  %v578_v11 = vstv %s1180_s7  ;;  %v587_v12 = vmul.f32 %v1647_v4, %v586_v9  ;;  %s1191_s23 = sld [smem:[#allocation2 + $0x10]] }
  0x64   : > { %v602_v13 = vstv %s1183_s9  ;;  %v579_v14 = vmul.f32 %v1647_v4, %v578_v11  ;;  %s1194_s26 = sld [smem:[#allocation2 + $0x61]] }
  0x65   : > { %v594_v15 = vstv %s1182_s10  ;;  %v603_v17 = vmul.f32 %v1647_v4, %v602_v13  ;;  %s1193_s28 = sld [smem:[#allocation2 + $0x46]] }
  0x66   : > { %v618_v18 = vstv %s1185_s11  ;;  %v595_v19 = vmul.f32 %v1647_v4, %v594_v15  ;;  %s1196_s29 = sld [smem:[#allocation2 + $0x2c]] }
  0x67   : > { %423 = vrot.lane.b32.xlu1 %v421_v41, %s1449_s8  ;;  %415 = vrot.lane.b32.xlu0 %v413_v43, %s1449_s8  ;;  %v610_v20 = vstv %s1184_s18  ;;  %v619_v21 = vmul.f32 %v1647_v4, %v618_v18  ;;  %s1195_s30 = sld [smem:[#allocation2 + $0x11]] }
  0x68   : > { %v653_v23 = vstv %s1192_s21  ;;  %v611_v24 = vmul.f32 %v1647_v4, %v610_v20  ;;  %s1198_s5 = sld [smem:[#allocation2 + $0x62]] }
  0x69   : > { %v645_v25 = vstv %s1191_s23  ;;  %v654_v26 = vmul.f32 %v1666_v22, %v653_v23  ;;  %s1197_s27 = sld [smem:[#allocation2 + $0x47]] }
  0x6a   : > { %v669_v27 = vstv %s1194_s26  ;;  %v646_v28 = vmul.f32 %v1666_v22, %v645_v25  ;;  %s1205_s6 = sld [smem:[#allocation2 + $0x2e]] }
  0x6b   : > { %439 = vrot.lane.b32.xlu1 %v437_v45, %s1450_s19  ;;  %431 = vrot.lane.b32.xlu0 %v429_v47, %s1450_s19  ;;  %v661_v29 = vstv %s1193_s28  ;;  %v670_v30 = vmul.f32 %v1666_v22, %v669_v27  ;;  %s1204_s7 = sld [smem:[#allocation2 + $0x13]] }
  0x6c   : > { %v685_v31 = vstv %s1196_s29  ;;  %v662_v32 = vmul.f32 %v1666_v22, %v661_v29  ;;  %s1207_s9 = sld [smem:[#allocation2 + $0x64]] }
  0x6d   : > { %v677_v34 = vstv %s1195_s30  ;;  %v686_v35 = vmul.f32 %v1666_v22, %v685_v31  ;;  %s1206_s10 = sld [smem:[#allocation2 + $0x49]] }
  0x6e   : > { %v701_v36 = vstv %s1198_s5  ;;  %v678_v37 = vmul.f32 %v1666_v22, %v677_v34  ;;  %s1209_s11 = sld [smem:[#allocation2 + $0x2f]] }
  0x6f   : > { %455 = vrot.lane.b32.xlu1 %v453_v49, %s1450_s19  ;;  %447 = vrot.lane.b32.xlu0 %v445_v52, %s1450_s19  ;;  %v693_v38 = vstv %s1197_s27  ;;  %v702_v39 = vmul.f32 %v1666_v22, %v701_v36  ;;  %s1208_s18 = sld [smem:[#allocation2 + $0x14]] }
  0x70   : > { %v736_v41 = vstv %s1205_s6  ;;  %v694_v42 = vmul.f32 %v1666_v22, %v693_v38  ;;  %s1211_s21 = sld [smem:[#allocation2 + $0x65]] }
  0x71   : > { %v728_v43 = vstv %s1204_s7  ;;  %v737_v44 = vmul.f32 %v1685_v40, %v736_v41  ;;  %s1210_s23 = sld [smem:[#allocation2 + $0x4a]] }
  0x72   : > { %v752_v45 = vstv %s1207_s9  ;;  %v729_v46 = vmul.f32 %v1685_v40, %v728_v43  ;;  %s1218_s26 = sld [smem:[#allocation2 + $0x31]] }
  0x73   : > { %490 = vrot.lane.b32.xlu1 %v488_v54, %s1449_s8  ;;  %482 = vrot.lane.b32.xlu0 %v480_v56, %s1449_s8  ;;  %v744_v47 = vstv %s1206_s10  ;;  %v753_v48 = vmul.f32 %v1685_v40, %v752_v45  ;;  %s1217_s28 = sld [smem:[#allocation2 + $0x16]] }
  0x74   : > { %v768_v49 = vstv %s1209_s11  ;;  %v745_v51 = vmul.f32 %v1685_v40, %v744_v47  ;;  %s1124_s29 = sld [smem:[#allocation2 + $0x36]] }
  0x75   : > { %v760_v52 = vstv %s1208_s18  ;;  %v769_v53 = vmul.f32 %v1685_v40, %v768_v49  ;;  %s1220_s30 = sld [smem:[#allocation2 + $0x67]] }
  0x76   : > { %v784_v54 = vstv %s1211_s21  ;;  %v761_v55 = vmul.f32 %v1685_v40, %v760_v52  ;;  %s213_s5 = sld [smem:[#allocation2]] }
  0x77   : > { %506 = vrot.lane.b32.xlu1 %v504_v58, %s1449_s8  ;;  %498 = vrot.lane.b32.xlu0 %v496_v60, %s1449_s8  ;;  %v776_v56 = vstv %s1210_s23  ;;  %s1701_s27 = sld [smem:[#allocation2 + $0x4c]]  ;;  %v785_v57 = vmul.f32 %v1685_v40, %v784_v54  ;;  %v1708_v58 = vld [vmem:[%s1572_s4 + $0x21] sm:$0xff] }
  0x78   : > { %s1705_s6 = sld [smem:[#allocation2 + $0x51]]  ;;  %v819_v59 = vstv %s1218_s26  ;;  %v777_v60 = vmul.f32 %v1685_v40, %v776_v56 }
  0x79   : > { %s1710_s7 = sld [smem:[#allocation2 + $0x32]]  ;;  %v811_v61 = vstv %s1217_s28 }
  0x7a   : > { %s1714_s9 = sld [smem:[#allocation2 + $0x1b]]  ;;  %v222_v63 = vstv %s1124_s29  ;;  %v812_v2 = vmul.f32 %v1708_v58, %v811_v61 }
  0x7b   : > { %522 = vrot.lane.b32.xlu1 %v520_v62, %s1450_s19  ;;  %514 = vrot.lane.b32.xlu0 %v512_v1, %s1450_s19  ;;  %s1716_s10 = sld [smem:[#allocation2 + $0x17]]  ;;  %v820_v62 = vmul.f32 %v1708_v58, %v819_v59  ;;  %v835_v1 = vstv %s1220_s30  ;;  %v223_v5 = vmul.f32 %v222_v63, %v1575_v0 }
  0x7c   : > { %s1720_s11 = sld [smem:[#allocation2 + $0x68]]  ;;  %v836_v7 = vmul.f32 %v1708_v58, %v835_v1 }
  0x7d   : > { %s1726_s18 = sld [smem:[#allocation2 + $0x4d]] }
  0x7e   : > { %s1733_s21 = sld [smem:[#allocation2 + $0x34]] }
  0x7f   : > { %538 = vrot.lane.b32.xlu1 %v536_v3, %s1450_s19  ;;  %530 = vrot.lane.b32.xlu0 %v528_v6, %s1450_s19  ;;  %v214_v3 = vstv %s213_s5  ;;  %v827_v6 = vstv %s1701_s27  ;;  %s1738_s23 = sld [smem:[#allocation2 + $0x1e]] }
  0x80   : > { %v215_v9 = vmul.f32 %v214_v3, %v1575_v0  ;;  %v218_v13 = vstv %s1714_s9  ;;  %s1742_s26 = sld [smem:[#allocation2 + $0x19]] }
  0x81   : > { %s1746_s28 = sld [smem:[#allocation2 + $0x3]] }
  0x82   : > { %v867_v23 = vstv %s1720_s11  ;;  %s1750_s29 = sld [smem:[#allocation2 + $0x6a]] }
  0x83   : > { %573 = vrot.lane.b32.xlu1 %v571_v8, %s1449_s8  ;;  %565 = vrot.lane.b32.xlu0 %v563_v10, %s1449_s8  ;;  %v226_v8 = vstv %s1705_s6  ;;  %v851_v10 = vstv %s1710_s7  ;;  %s1754_s30 = sld [smem:[#allocation2 + $0x54]] }
  0x84   : > { %v227_v15 = vmul.f32 %v226_v8, %v1575_v0  ;;  %v859_v27 = vstv %s1726_s18  ;;  %s1757_s5 = sld [smem:[#allocation2 + $0x4f]]  ;;  %v902_v31 = vstv %s1733_s21 }
  0x85   : > { %s1761_s27 = sld [smem:[#allocation2 + $0x39]]  ;;  %v860_v34 = vmul.f32 %v1708_v58, %v859_v27 }
  0x86   : > { %s1767_s6 = sld [smem:[#allocation2 + $0x35]] }
  0x87   : > { %589 = vrot.lane.b32.xlu1 %v587_v12, %s1449_s8  ;;  %581 = vrot.lane.b32.xlu0 %v579_v14, %s1449_s8  ;;  %v828_v12 = vmul.f32 %v1708_v58, %v827_v6  ;;  %s1773_s7 = sld [smem:[#allocation2 + $0x1a]]  ;;  %v297_v41 = vstv %s1746_s28 }
  0x88   : > { %v298_v49 = vmul.f32 %v1590_v16, %v297_v41  ;;  %s1787_s9 = sld [smem:[#allocation2 + $0x50]] }
  0x89   : > { %v309_v47 = vstv %s1754_s30  ;;  %s1802_s11 = sld [smem:[#allocation2 + $0x6]] }
  0x8a   : > { %s1151_s18 = sld [smem:[#allocation2 + $0x57]] }
  0x8b   : > { %605 = vrot.lane.b32.xlu1 %v603_v17, %s1450_s19  ;;  %597 = vrot.lane.b32.xlu0 %v595_v19, %s1450_s19  ;;  %v843_v17 = vstv %s1716_s10  ;;  %v852_v19 = vmul.f32 %v1708_v58, %v851_v10  ;;  %v305_v54 = vstv %s1761_s27  ;;  %s1796_s10 = sld [smem:[#allocation2 + $0x21]] }
  0x8c   : > { %v844_v25 = vmul.f32 %v1708_v58, %v843_v17  ;;  %v934_v59 = vstv %s1767_s6  ;;  %v306_v1 = vmul.f32 %v1590_v16, %v305_v54  ;;  %s1150_s21 = sld [smem:[#allocation2 + $0x3c]] }
  0x8d   : > { %s1175_s28 = sld [smem:[#allocation2 + $0x27]] }
  0x8e   : > { %s1177_s30 = sld [smem:[#allocation2 + $0x5d]] }
  0x8f   : > { %621 = vrot.lane.b32.xlu1 %v619_v21, %s1450_s19  ;;  %613 = vrot.lane.b32.xlu0 %v611_v24, %s1450_s19  ;;  %v219_v21 = vmul.f32 %v218_v13, %v1575_v0  ;;  %v868_v0 = vmul.f32 %v1708_v58, %v867_v23  ;;  %v380_v23 = vstv %s1802_s11  ;;  %s1188_s27 = sld [smem:[#allocation2 + $0x2a]] }
  0x90   : > { %v392_v27 = vstv %s1151_s18  ;;  %s1187_s6 = sld [smem:[#allocation2 + $0xf]] }
  0x91   : > { %s1203_s11 = sld [smem:[#allocation2 + $0x63]] }
  0x92   : > { %s1202_s18 = sld [smem:[#allocation2 + $0x48]] }
  0x93   : > { %656 = vrot.lane.b32.xlu1 %v654_v26, %s1449_s8  ;;  %648 = vrot.lane.b32.xlu0 %v646_v28, %s1449_s8 }
  0x97   : > { %672 = vrot.lane.b32.xlu1 %v670_v30, %s1449_s8  ;;  %664 = vrot.lane.b32.xlu0 %v662_v32, %s1449_s8  ;;  %v1764_v30 = vld [vmem:[%s1572_s4 + $0x22] sm:$0xff]  ;;  %s1780_s4 = sld [smem:[#allocation2 + $0x6b]] }
  0x9b   : > { %688 = vrot.lane.b32.xlu1 %v686_v35, %s1450_s19  ;;  %680 = vrot.lane.b32.xlu0 %v678_v37, %s1450_s19  ;;  %v301_v35 = vstv %s1738_s23  ;;  %v894_v37 = vstv %s1742_s26  ;;  %s1161_s23 = sld [smem:[#allocation2 + $0x9]] }
  0x9c   : > { %v302_v43 = vmul.f32 %v1590_v16, %v301_v35  ;;  %v393_v35 = vmul.f32 %v1609_v33, %v392_v27  ;;  %s1164_s26 = sld [smem:[#allocation2 + $0x5a]] }
  0x9d   : > { %v950_v8 = vstv %s1780_s4  ;;  %s1189_s4 = sld [smem:[#allocation2 + $0x45]] }
  0x9f   : > { %704 = vrot.lane.b32.xlu1 %v702_v39, %s1450_s19  ;;  %696 = vrot.lane.b32.xlu0 %v694_v42, %s1450_s19  ;;  %v903_v39 = vmul.f32 %v1764_v30, %v902_v31  ;;  %v388_v31 = vstv %s1150_s21  ;;  %s1214_s21 = sld [smem:[#allocation2 + $0x30]] }
  0xa2   : > { %v475_v54 = vstv %s1164_s26  ;;  %s1215_s26 = sld [smem:[#allocation2 + $0x4b]] }
  0xa3   : > { %739 = vrot.lane.b32.xlu1 %v737_v44, %s1449_s8  ;;  %731 = vrot.lane.b32.xlu0 %v729_v46, %s1449_s8  ;;  %v918_v44 = vstv %s1750_s29  ;;  %v895_v46 = vmul.f32 %v1764_v30, %v894_v37  ;;  %s1174_s29 = sld [smem:[#allocation2 + $0xc]] }
  0xa7   : > { %755 = vrot.lane.b32.xlu1 %v753_v48, %s1449_s8  ;;  %747 = vrot.lane.b32.xlu0 %v745_v51, %s1449_s8  ;;  %v910_v51 = vstv %s1757_s5  ;;  %s1176_s5 = sld [smem:[#allocation2 + $0x42]] }
  0xa8   : > { %v911_v61 = vmul.f32 %v1764_v30, %v910_v51 }
  0xab   : > { %771 = vrot.lane.b32.xlu1 %v769_v53, %s1450_s19  ;;  %763 = vrot.lane.b32.xlu0 %v761_v55, %s1450_s19  ;;  %v919_v53 = vmul.f32 %v1764_v30, %v918_v44 }
  0xaf   : > { %787 = vrot.lane.b32.xlu1 %v785_v57, %s1450_s19  ;;  %779 = vrot.lane.b32.xlu0 %v777_v60, %s1450_s19  ;;  %v310_v57 = vmul.f32 %v1590_v16, %v309_v47 }
  0xb3   : > { %822 = vrot.lane.b32.xlu1 %v820_v62, %s1449_s8  ;;  %814 = vrot.lane.b32.xlu0 %v812_v2, %s1449_s8  ;;  %v926_v2 = vstv %s1773_s7  ;;  %s1190_s7 = sld [smem:[#allocation2 + $0x60]] }
  0xb4   : > { %v927_v10 = vmul.f32 %v1764_v30, %v926_v2 }
  0xb5   : > { %v250_v11 = vpop.permute.xlu1 %249  ;;  %v234_v18 = vpop.permute.xlu0 %233 }
  0xb6   : > { %v252_v14 = vadd.f32 %v250_v11, %v223_v5  ;;  %v236_v20 = vadd.f32 %v234_v18, %v215_v9  ;;  %v935_v5 = vmul.f32 %v1764_v30, %v934_v59 }
  0xb7   : > { %838 = vrot.lane.b32.xlu1 %v836_v7, %s1449_s8  ;;  %830 = vrot.lane.b32.xlu0 %v828_v12, %s1449_s8  ;;  %v942_v12 = vstv %s1787_s9  ;;  %s1201_s9 = sld [smem:[#allocation2 + $0x2d]] }
  0xb8   : > { %v943_v18 = vmul.f32 %v1764_v30, %v942_v12  ;;  %v546_v12 = vstv %s1174_s29  ;;  %s1229_s29 = sld [smem:[#allocation2 + $0x69]] }
  0xb9   : > { %v258_v24 = vpop.permute.xlu1 %257  ;;  %v242_v28 = vpop.permute.xlu0 %241 }
  0xba   : > { %v260_v26 = vadd.f32 %v258_v24, %v227_v15  ;;  %v244_v29 = vadd.f32 %v242_v28, %v219_v21 }
  0xbb   : > { %854 = vrot.lane.b32.xlu1 %v852_v19, %s1450_s19  ;;  %846 = vrot.lane.b32.xlu0 %v844_v25, %s1450_s19  ;;  %v384_v19 = vstv %s1796_s10  ;;  %s1200_s10 = sld [smem:[#allocation2 + $0x12]] }
  0xbc   : > { %v385_v25 = vmul.f32 %v1609_v33, %v384_v19  ;;  %v547_v19 = vmul.f32 %v1647_v4, %v546_v12  ;;  %v724_v12 = vstv %s1203_s11 }
  0xbd   : > { %v274_v32 = vpop.permute.xlu1 %273  ;;  %v266_v38 = vpop.permute.xlu0 %265 }
  0xbe   : > { %v276_v36 = vadd.f32 %v274_v32, %v244_v29  ;;  %v268_v42 = vadd.f32 %v266_v38, %v236_v20 }
  0xbf   : > { %870 = vrot.lane.b32.xlu1 %v868_v0, %s1450_s19  ;;  %862 = vrot.lane.b32.xlu0 %v860_v34, %s1450_s19  ;;  %v381_v0 = vmul.f32 %v1609_v33, %v380_v23 }
  0xc0   : > { %v303_v56 = vadd.f32 %v302_v43, %v276_v36  ;;  %v299_v63 = vadd.f32 %v298_v49, %v268_v42  ;;  %v463_v49 = vstv %s1161_s23  ;;  %s1216_s23 = sld [smem:[#allocation2 + $0x66]] }
  0xc1   : > { %v290_v45 = vpop.permute.xlu1 %289  ;;  %v282_v52 = vpop.permute.xlu0 %281 }
  0xc2   : > { %v292_v48 = vadd.f32 %v290_v45, %v260_v26  ;;  %v284_v55 = vadd.f32 %v282_v52, %v252_v14  ;;  %v951_v14 = vmul.f32 %v1764_v30, %v950_v8 }
  0xc3   : > { %905 = vrot.lane.b32.xlu1 %v903_v39, %s1449_s8  ;;  %897 = vrot.lane.b32.xlu0 %v895_v46, %s1449_s8  ;;  %v389_v39 = vmul.f32 %v1609_v33, %v388_v31 }
  0xc4   : > { %v311_v7 = vadd.f32 %v310_v57, %v292_v48  ;;  %v307_v11 = vadd.f32 %v306_v1, %v284_v55 }
  0xc5   : > { %v325_v60 = vpop.permute.xlu1 %324  ;;  %v317_v3 = vpop.permute.xlu0 %316 }
  0xc6   : > { %v327_v62 = vadd.f32 %v325_v60, %v303_v56  ;;  %v319_v6 = vadd.f32 %v317_v3, %v299_v63  ;;  %v464_v56 = vmul.f32 %v1628_v50, %v463_v49 }
  0xc7   : > { %921 = vrot.lane.b32.xlu1 %v919_v53, %s1449_s8  ;;  %913 = vrot.lane.b32.xlu0 %v911_v61, %s1449_s8  ;;  %s1162_s8 = sld [smem:[#allocation2 + $0x24]]  ;;  %v476_v61 = vmul.f32 %v1628_v50, %v475_v54 }
  0xc9   : > { %v341_v9 = vpop.permute.xlu1 %340  ;;  %v333_v13 = vpop.permute.xlu0 %332 }
  0xca   : > { %v343_v16 = vadd.f32 %v341_v9, %v311_v7  ;;  %v335_v15 = vadd.f32 %v333_v13, %v307_v11 }
  0xcb   : > { %937 = vrot.lane.b32.xlu1 %v935_v5, %s1450_s19  ;;  %929 = vrot.lane.b32.xlu0 %v927_v10, %s1450_s19 }
  0xcd   : > { %v357_v17 = vpop.permute.xlu1 %356  ;;  %v349_v21 = vpop.permute.xlu0 %348  ;;  %v467_v45 = vstv %s1162_s8  ;;  %s1213_s8 = sld [smem:[#allocation2 + $0x15]] }
  0xce   : > { %v359_v20 = vadd.f32 %v357_v17, %v327_v62  ;;  %v351_v24 = vadd.f32 %v349_v21, %v319_v6  ;;  %v468_v52 = vmul.f32 %v1628_v50, %v467_v45  ;;  %v558_v17 = vstv %s1177_s30  ;;  %s1228_s30 = sld [smem:[#allocation2 + $0x4e]] }
  0xcf   : > { %953 = vrot.lane.b32.xlu1 %v951_v14, %s1450_s19  ;;  %945 = vrot.lane.b32.xlu0 %v943_v18, %s1450_s19  ;;  %s1163_s19 = sld [smem:[#allocation2 + $0x3f]]  ;;  %v554_v21 = vstv %s1176_s5 }
  0xd0   : > { %v386_v34 = vadd.f32 %v385_v25, %v359_v20  ;;  %v382_v38 = vadd.f32 %v381_v0, %v351_v24  ;;  %v555_v31 = vmul.f32 %v1647_v4, %v554_v21  ;;  %s1238_s5 = sld [smem:[#allocation5 + $0x1]] }
  0xd1   : > { %v373_v26 = vpop.permute.xlu1 %372  ;;  %v365_v29 = vpop.permute.xlu0 %364 }
  0xd2   : > { %v375_v28 = vadd.f32 %v373_v26, %v343_v16  ;;  %v367_v32 = vadd.f32 %v365_v29, %v335_v15  ;;  %v550_v16 = vstv %s1175_s28  ;;  %v559_v26 = vmul.f32 %v1647_v4, %v558_v17  ;;  %s1226_s28 = sld [smem:[#allocation2 + $0x18]] }
  0xd3   : > { %v551_v14 = vmul.f32 %v1647_v4, %v550_v16  ;;  %v720_v17 = vstv %s1202_s18  ;;  %s1249_s18 = sshll.u32 %s1437_s15, 9 }
  0xd4   : > { %v394_v43 = vadd.f32 %v393_v35, %v375_v28  ;;  %v390_v47 = vadd.f32 %v389_v39, %v367_v32 }
  0xd5   : > { %v408_v36 = vpop.permute.xlu1 %407  ;;  %v400_v41 = vpop.permute.xlu0 %399  ;;  %v471_v33 = vstv %s1163_s19  ;;  %s1227_s19 = sld [smem:[#allocation2 + $0x33]] }
  0xd6   : > { %v410_v37 = vadd.f32 %v408_v36, %v386_v34  ;;  %v402_v42 = vadd.f32 %v400_v41, %v382_v38  ;;  %v472_v2 = vmul.f32 %v1628_v50, %v471_v33  ;;  %v633_v41 = vstv %s1188_s27  ;;  %s957_s27 = sld [smem:[#allocation5]] }
  0xd7   : > { %v634_v45 = vmul.f32 %v1666_v22, %v633_v41 }
  0xd9   : > { %v424_v44 = vpop.permute.xlu1 %423  ;;  %v416_v48 = vpop.permute.xlu0 %415 }
  0xda   : > { %v426_v46 = vadd.f32 %v424_v44, %v394_v43  ;;  %v418_v51 = vadd.f32 %v416_v48, %v390_v47  ;;  %v629_v43 = vstv %s1187_s6  ;;  %v641_v47 = vstv %s1190_s7  ;;  %s202_s6 = sand.u32 1, %s1429_s13   ;;  %s1242_s7 = sld [smem:[#allocation5 + $0x3]] }
  0xdb   : > { %v630_v49 = vmul.f32 %v1666_v22, %v629_v43  ;;  %s1864_s15 = scalar_lea.sflag [#allocation3], %s202_s6 }
  0xdd   : > { %v440_v53 = vpop.permute.xlu1 %439  ;;  %v432_v57 = vpop.permute.xlu0 %431 }
  0xde   : > { %v442_v55 = vadd.f32 %v440_v53, %v410_v37  ;;  %v434_v59 = vadd.f32 %v432_v57, %v402_v42 }
  0xe0   : > { %v469_v60 = vadd.f32 %v468_v52, %v442_v55  ;;  %v465_v1 = vadd.f32 %v464_v56, %v434_v59  ;;  %v637_v52 = vstv %s1189_s4  ;;  %v642_v56 = vmul.f32 %v1666_v22, %v641_v47  ;;  %s1845_s4 = sld [smem:[#allocation5 + $0x2]] }
  0xe1   : > { %v456_v62 = vpop.permute.xlu1 %455  ;;  %v448_v3 = vpop.permute.xlu0 %447 }
  0xe2   : > { %v458_v63 = vadd.f32 %v456_v62, %v426_v46  ;;  %v450_v5 = vadd.f32 %v448_v3, %v418_v51 }
  0xe4   : > { %v477_v6 = vadd.f32 %v476_v61, %v458_v63  ;;  %v473_v8 = vadd.f32 %v472_v2, %v450_v5  ;;  %v638_v61 = vmul.f32 %v1666_v22, %v637_v52 }
  0xe5   : > { %v491_v7 = vpop.permute.xlu1 %490  ;;  %v483_v9 = vpop.permute.xlu0 %482 }
  0xe6   : > { %v493_v13 = vadd.f32 %v491_v7, %v469_v60  ;;  %v485_v18 = vadd.f32 %v483_v9, %v465_v1  ;;  %v716_v7 = vstv %s1201_s9  ;;  %v712_v9 = vstv %s1200_s10  ;;  %s1121_s9 = sshll.u32 %s202_s6, 5 }
  0xe7   : > { %v717_v16 = vmul.f32 %v1685_v40, %v716_v7  ;;  %v890_v7 = vstv %s1229_s29  ;;  %s204_s10 = scalar_lea.vmem [#allocation7], %s1121_s9 }
  0xe8   : > { %s992_s11 = sshll.u32 %s204_s10, 4  ;;  %s1858_s11 = int_to_ptr.vmem [resolvable:$true] %s992_s11 }
  0xe9   : > { %v507_v10 = vpop.permute.xlu1 %506  ;;  %v499_v11 = vpop.permute.xlu0 %498 }
  0xea   : > { %v509_v23 = vadd.f32 %v507_v10, %v477_v6  ;;  %v501_v28 = vadd.f32 %v499_v11, %v473_v8 }
  0xed   : > { %v523_v15 = vpop.permute.xlu1 %522  ;;  %v515_v20 = vpop.permute.xlu0 %514 }
  0xee   : > { %v525_v50 = vadd.f32 %v523_v15, %v493_v13  ;;  %v517_v24 = vadd.f32 %v515_v20, %v485_v18  ;;  %v725_v20 = vmul.f32 %v1685_v40, %v724_v12 }
  0xf0   : > { %v552_v25 = vadd.f32 %v551_v14, %v525_v50  ;;  %v548_v29 = vadd.f32 %v547_v19, %v517_v24  ;;  %v713_v14 = vmul.f32 %v1685_v40, %v712_v9 }
  0xf1   : > { %v539_v27 = vpop.permute.xlu1 %538  ;;  %v531_v32 = vpop.permute.xlu0 %530 }
  0xf2   : > { %v541_v0 = vadd.f32 %v539_v27, %v509_v23  ;;  %v533_v34 = vadd.f32 %v531_v32, %v501_v28 }
  0xf4   : > { %v560_v35 = vadd.f32 %v559_v26, %v541_v0  ;;  %v556_v37 = vadd.f32 %v555_v31, %v533_v34  ;;  %v721_v26 = vmul.f32 %v1685_v40, %v720_v17 }
  0xf5   : > { %v574_v36 = vpop.permute.xlu1 %573  ;;  %v566_v38 = vpop.permute.xlu0 %565 }
  0xf6   : > { %v576_v44 = vadd.f32 %v574_v36, %v552_v25  ;;  %v568_v48 = vadd.f32 %v566_v38, %v548_v29 }
  0xf9   : > { %v590_v39 = vpop.permute.xlu1 %589  ;;  %v582_v42 = vpop.permute.xlu0 %581 }
  0xfa   : > { %v592_v53 = vadd.f32 %v590_v39, %v560_v35  ;;  %v584_v33 = vadd.f32 %v582_v42, %v556_v37  ;;  %v799_v35 = vstv %s1214_s21  ;;  %v795_v37 = vstv %s1213_s8 }
  0xfb   : > { %v800_v39 = vmul.f32 %v1708_v58, %v799_v35  ;;  %v807_v42 = vstv %s1216_s23  ;;  %s1856_s23 = scalar_lea.hbm %s1912_s3, %s1249_s18 }
  0xfd   : > { %v606_v46 = vpop.permute.xlu1 %605  ;;  %v598_v51 = vpop.permute.xlu0 %597 }
  0xfe   : > { %v608_v4 = vadd.f32 %v606_v46, %v576_v44  ;;  %v600_v54 = vadd.f32 %v598_v51, %v568_v48  ;;  %v796_v44 = vmul.f32 %v1708_v58, %v795_v37  ;;  %v803_v46 = vstv %s1215_s26  ;;  %s1361_s26 = scalar_lea.vmem %s1858_s11, 512 }
  0xff   : > { %p1362_p8 = scmp.ne.s32.totalorder %s1858_s11, %s1361_s26 }
 0x100   : > { %v635_v55 = vadd.f32 %v634_v45, %v608_v4  ;;  %v631_v60 = vadd.f32 %v630_v49, %v600_v54  ;;  %v808_v49 = vmul.f32 %v1708_v58, %v807_v42 }
 0x101   : > { %v622_v57 = vpop.permute.xlu1 %621  ;;  %v614_v62 = vpop.permute.xlu0 %613  ;;  %p1363_p11 = pnand %p1362_p8, %p1924_p10 }
 0x102   : > { %v624_v59 = vadd.f32 %v622_v57, %v592_v53  ;;  %v616_v63 = vadd.f32 %v614_v62, %v584_v33 }
 0x103   : > { %p1364_p13 = pneg %p1363_p11 }
 0x104   : > { %v643_v1 = vadd.f32 %v642_v56, %v624_v59  ;;  %v639_v3 = vadd.f32 %v638_v61, %v616_v63  ;;  %v882_v63 = vstv %s1227_s19  ;;  %s1451_s19 = smov [#allocation7]  }
 0x105   : > { %v657_v2 = vpop.permute.xlu1 %656  ;;  %v649_v5 = vpop.permute.xlu0 %648 }
 0x106   : > { %v659_v10 = vadd.f32 %v657_v2, %v635_v55  ;;  %v651_v13 = vadd.f32 %v649_v5, %v631_v60  ;;  %v804_v55 = vmul.f32 %v1708_v58, %v803_v46  ;;  %v878_v2 = vstv %s1226_s28  ;;  %s1365_s28 = sshll.u32 %s1451_s19, 4  ;;  %s1366_s28 = int_to_ptr.vmem [resolvable:$false] %s1365_s28 }
 0x107   : > { %v883_v5 = vmul.f32 %v1764_v30, %v882_v63  ;;  %v879_v9 = vmul.f32 %v1764_v30, %v878_v2  ;;  %s1367_s29 = scalar_lea.vmem %s1366_s28, 1024  ;;  %p1368_p1 = scmp.lt.s32.totalorder %s1858_s11, %s1366_s28 }
 0x108   : > { %p1369_p6 = scmp.lt.s32.totalorder %s1367_s29, %s1361_s26 }
 0x109   : > { %v673_v6 = vpop.permute.xlu1 %672  ;;  %v665_v8 = vpop.permute.xlu0 %664 }
 0x10a   : > { %v675_v18 = vadd.f32 %v673_v6, %v643_v1  ;;  %v667_v23 = vadd.f32 %v665_v8, %v639_v3  ;;  %p1370_p7 = por %p1369_p6, %p1368_p1 }
 0x10c   : > { %p1371_p9 = pnand %p1370_p7, %p1364_p13 }
 0x10d   : > { %v689_v11 = vpop.permute.xlu1 %688  ;;  %v681_v15 = vpop.permute.xlu0 %680 }
 0x10e   : > { %v691_v22 = vadd.f32 %v689_v11, %v659_v10  ;;  %v683_v50 = vadd.f32 %v681_v15, %v651_v13 }
 0x110   : > { %v718_v19 = vadd.f32 %v717_v16, %v691_v22  ;;  %v714_v25 = vadd.f32 %v713_v14, %v683_v50  ;;  %v886_v16 = vstv %s1228_s30  ;;  %v891_v22 = vmul.f32 %v1764_v30, %v890_v7 }
 0x111   : > { %v705_v21 = vpop.permute.xlu1 %704  ;;  %v697_v27 = vpop.permute.xlu0 %696  ;;  %v887_v50 = vmul.f32 %v1764_v30, %v886_v16 }
 0x112   : > { %v707_v24 = vadd.f32 %v705_v21, %v675_v18  ;;  %v699_v28 = vadd.f32 %v697_v27, %v667_v23 }
 0x114   : > { %v726_v0 = vadd.f32 %v725_v20, %v707_v24  ;;  %v722_v31 = vadd.f32 %v721_v26, %v699_v28 }
 0x115   : > { %v740_v29 = vpop.permute.xlu1 %739  ;;  %v732_v32 = vpop.permute.xlu0 %731 }
 0x116   : > { %v742_v38 = vadd.f32 %v740_v29, %v718_v19  ;;  %v734_v43 = vadd.f32 %v732_v32, %v714_v25  ;;  %v958_v32 = vstv %s957_s27 }
 0x119   : > { %v756_v34 = vpop.permute.xlu1 %755  ;;  %v748_v36 = vpop.permute.xlu0 %747 }
 0x11a   : > { %v758_v47 = vadd.f32 %v756_v34, %v726_v0  ;;  %v750_v52 = vadd.f32 %v748_v36, %v722_v31  ;;  %v963_v0 = vstv %s1238_s5 }
 0x11d   : > { %v772_v41 = vpop.permute.xlu1 %771  ;;  %v764_v45 = vpop.permute.xlu0 %763 }
 0x11e   : > { %v774_v40 = vadd.f32 %v772_v41, %v742_v38  ;;  %v766_v48 = vadd.f32 %v764_v45, %v734_v43  ;;  %v973_v38 = vstv %s1242_s7 }
 0x120   : > { %v801_v4 = vadd.f32 %v800_v39, %v774_v40  ;;  %v797_v54 = vadd.f32 %v796_v44, %v766_v48  ;;  %v968_v40 = vstv %s1845_s4 }
 0x121   : > { %v788_v51 = vpop.permute.xlu1 %787  ;;  %v780_v56 = vpop.permute.xlu0 %779 }
 0x122   : > { %v790_v53 = vadd.f32 %v788_v51, %v758_v47  ;;  %v782_v57 = vadd.f32 %v780_v56, %v750_v52 }
 0x124   : > { %v809_v33 = vadd.f32 %v808_v49, %v790_v53  ;;  %v805_v60 = vadd.f32 %v804_v55, %v782_v57 }
 0x125   : > { %v823_v59 = vpop.permute.xlu1 %822  ;;  %v815_v61 = vpop.permute.xlu0 %814 }
 0x126   : > { %v825_v3 = vadd.f32 %v823_v59, %v801_v4  ;;  %v817_v8 = vadd.f32 %v815_v61, %v797_v54 }
 0x129   : > { %v839_v62 = vpop.permute.xlu1 %838  ;;  %v831_v1 = vpop.permute.xlu0 %830 }
 0x12a   : > { %v841_v11 = vadd.f32 %v839_v62, %v809_v33  ;;  %v833_v15 = vadd.f32 %v831_v1, %v805_v60 }
 0x12d   : > { %v855_v6 = vpop.permute.xlu1 %854  ;;  %v847_v10 = vpop.permute.xlu0 %846 }
 0x12e   : > { %v857_v58 = vadd.f32 %v855_v6, %v825_v3  ;;  %v849_v12 = vadd.f32 %v847_v10, %v817_v8 }
 0x130   : > { %v884_v13 = vadd.f32 %v883_v5, %v857_v58  ;;  %v880_v18 = vadd.f32 %v879_v9, %v849_v12 }
 0x131   : > { %v871_v14 = vpop.permute.xlu1 %870  ;;  %v863_v19 = vpop.permute.xlu0 %862 }
 0x132   : > { %v873_v17 = vadd.f32 %v871_v14, %v841_v11  ;;  %v865_v20 = vadd.f32 %v863_v19, %v833_v15 }
 0x134   : > { %v892_v21 = vadd.f32 %v891_v22, %v873_v17  ;;  %v888_v24 = vadd.f32 %v887_v50, %v865_v20 }
 0x135   : > { %v906_v23 = vpop.permute.xlu1 %905  ;;  %v898_v25 = vpop.permute.xlu0 %897 }
 0x136   : > { %v908_v28 = vadd.f32 %v906_v23, %v884_v13  ;;  %v900_v30 = vadd.f32 %v898_v25, %v880_v18 }
 0x139   : > { %v922_v26 = vpop.permute.xlu1 %921  ;;  %v914_v27 = vpop.permute.xlu0 %913 }
 0x13a   : > { %v924_v35 = vadd.f32 %v922_v26, %v892_v21  ;;  %v916_v41 = vadd.f32 %v914_v27, %v888_v24 }
 0x13d   : > { %v938_v29 = vpop.permute.xlu1 %937  ;;  %v930_v34 = vpop.permute.xlu0 %929 }
 0x13e   : > { %v940_v31 = vadd.f32 %v938_v29, %v908_v28  ;;  %v932_v37 = vadd.f32 %v930_v34, %v900_v30 }
 0x140   : > { %v964_v36 = vadd.f32 %v963_v0, %v940_v31  ;;  %v959_v42 = vadd.f32 %v958_v32, %v932_v37 }
 0x141   : > { %v954_v39 = vpop.permute.xlu1 %953  ;;  %v946_v44 = vpop.permute.xlu0 %945 }
 0x142   : > { %1239 = vst.msk [vmem:[%s204_s10 + $0x8] sm:$0xff] %vm960_vm0, %v964_v36  ;;  %v956_v43 = vadd.f32 %v954_v39, %v924_v35  ;;  %961 = vst.msk [vmem:[%s204_s10] sm:$0xff] %vm960_vm0, %v959_v42  ;;  %v948_v46 = vadd.f32 %v946_v44, %v916_v41 }
 0x144   : > { %v974_v45 = vadd.f32 %v973_v38, %v956_v43  ;;  %v969_v47 = vadd.f32 %v968_v40, %v948_v46 }
 0x146   : > { %1243 = vst.msk [vmem:[%s204_s10 + $0x18] sm:$0xff] %vm960_vm0, %v974_v45  ;;  %1241 = vst.msk [vmem:[%s204_s10 + $0x10] sm:$0xff] %vm960_vm0, %v969_v47 }
 0x147   : > { %1374 = shalt.err (!%p1371_p9)
}
 0x148   : > { %s1375_s30 = scalar_lea.hbm %s1856_s23, 512  ;;  %s1379_s6 = scalar_lea.hbm %s1912_s3, 1024 }
 0x149   : > { %p1376_p12 = scmp.ne.s32.totalorder %s1856_s23, %s1375_s30  ;;  %p1380_p3 = scmp.lt.s32.totalorder %s1856_s23, %s1912_s3 }
 0x14a   : > { %p1381_p5 = scmp.lt.s32.totalorder %s1379_s6, %s1375_s30 }
 0x14b   : > { %p1377_p0 = pnand %p1376_p12, %p1924_p10 }
 0x14c   : > { %p1382_p4 = por %p1381_p5, %p1380_p3 }
 0x14d   : > { %p1378_p2 = pneg %p1377_p0 }
 0x14f   : > { %p1383_p8 = pnand %p1382_p4, %p1378_p2 }
 0x151   : > { %1386 = shalt.err (!%p1383_p8)
}
 0x152   : > { %s1452_s9 = smov 128   ;;  %s1453_s10 = smov 8  }
 0x153   : > { %1259 = dma.vmem_to_hbm [thread:$0]  (%p1924_p10), %s1858_s11, 512, %s1856_s23, %s1864_s15, %s1452_s9, %s1452_s9, %s1453_s10  }
 0x154 PF: > { %p1276_p11 = scmp.ge.s32.totalorder %s1445_s17, 2  ;;  %s1007_s18 = sand.u32 1, %s1425_s12  }
 0x155   : > { %p1925_p13 = scmp.ne.s32.totalorder %s1918_s24, 0  ;;  %s1008_s21 = scalar_lea.sflag [#allocation3], %s1007_s18 }
 0x157   : > { %p1269_p1 = pnand %p1276_p11, %p1925_p13 }
 0x159   : > { %p1270_p6 = pneg %p1269_p1 }
 0x15b   : > { %1420 = dma.done.wait (%p1270_p6), %s1008_s21, 512  }
 0x15c   : > { %1422 = vsyncadd (%p1270_p6), %s1008_s21, 4294966784  ;;  %s18_s17 = sadd.s32 1, %s1445_s17   ;;  %s1926_s12 = smov %s1429_s13 }
 0x15d   : > { %p15_p7 = scmp.ge.s32.totalorder %s18_s17, 4   ;;  %s1927_s13 = smov %s1433_s14 }
 0x15e   : > { %s1928_s14 = smov %s1527_s25  ;;  %s1929_s15 = smov %s1441_s16 }
 0x15f   : > { %s1930_s16 = smov %s1932_s20  ;;  %17 = sbr.rel (!%p15_p7) target bundleno = 6 (0x6), region = 88 }
 0x164   :  { %1013 = vsyncpa [#allocation3], 1 }
 0x165   :  { %1015 = vsyncpa [#allocation3 + $0x1], 1 }
 0x166   :  { %1016 = vsyncpa [#allocation4], 1 }
 0x167   :  { %1018 = vsyncpa [#allocation4 + $0x1], 1 }
 0x168   :  { %1019 = vsyncpa [#allocation6], 1 }

</bundles_post_ra>
